<compile_context>
chip_gen: v6e
topology: v6e:2x2x1
jax: 0.10.0
libtpu: 0.0.40
codegen_flags: <defaults>
</compile_context>

<pallas_src>
import functools

import jax
import jax.numpy as jnp
import numpy as np
from jax.experimental import pallas as pl
from jax.experimental.pallas import tpu as pltpu


def _round_up(a, b):
    return ((a + b - 1) // b) * b


def _band_matrix(n_out_pad, n_in, win, stride, n_out_real, dtype):
    """(n_out_pad, n_in) 0/1 matrix; row p selects cols [p*stride, p*stride+win).

    Rows p >= n_out_real are all zero, so padded pooled positions contribute
    exact zeros downstream (no explicit zero-fill needed in the kernels).
    """
    p = np.arange(n_out_pad)[:, None]
    w = np.arange(n_in)[None, :]
    m = (w >= p * stride) & (w < p * stride + win) & (p < n_out_real)
    return jnp.asarray(m.astype(np.float32), dtype=dtype)


def _im2col_nhwc(x, kh, kw):
    """x: (B, C, H, W) -> (B, OH, OW, C*kh*kw); feature order (c, i, j)."""
    B, C, H, W = x.shape
    oh, ow = H - kh + 1, W - kw + 1
    cols = []
    for i in range(kh):
        for j in range(kw):
            cols.append(x[:, :, i:i + oh, j:j + ow])      # (B, C, OH, OW)
    p = jnp.stack(cols, axis=2)                           # (B, C, kh*kw, OH, OW)
    p = p.transpose(0, 3, 4, 1, 2)                        # (B, OH, OW, C, kh*kw)
    return p.reshape(B, oh, ow, C * kh * kw)


# ----------------------------------------------------------------------------
# Kernel 1: conv-as-matmul (bf16 MXU) + ReLU + diff + W-direction pooling
#           (band-matrix matmul).  grid = (B, n_row_tiles), both parallel.
# ----------------------------------------------------------------------------
def _conv_relu_diff_wpool_kernel(px_ref, py_ref, w_ref, pw_ref, o_ref, *,
                                 tile_oh, ow, inv_win):
    w = w_ref[...]                                        # (CKK, OC) bf16
    cx = jnp.dot(px_ref[...], w, preferred_element_type=jnp.float32)
    cy = jnp.dot(py_ref[...], w, preferred_element_type=jnp.float32)
    # Pooling is linear, so the feature difference can be taken before pooling.
    # 1/win applied in f32 *before* the bf16 downcast keeps magnitudes sane.
    d = (jnp.maximum(cx, 0.0) - jnp.maximum(cy, 0.0)) * inv_win   # (TM, OC)
    d = d.astype(jnp.bfloat16)
    pw = pw_ref[...]                                      # (PW_pad, OW) 0/1 bf16
    for r in range(tile_oh):                              # small static unroll
        dr = d[r * ow:(r + 1) * ow, :]                    # (OW, OC)
        pooled = jnp.dot(pw, dr, preferred_element_type=jnp.float32)
        o_ref[0, r, :, :] = pooled.astype(o_ref.dtype)    # (PW_pad, OC)


# ----------------------------------------------------------------------------
# Kernel 2: H-direction pooling (band-matrix matmul) + square + partial sum.
#           grid = (B, n_col_tiles), both parallel; partials reduced in XLA.
# ----------------------------------------------------------------------------
def _hpool_sq_partial_kernel(cs_ref, ph_ref, out_ref, *, tile_pw, scale):
    ph = ph_ref[...]                                      # (PH_pad, OH_pad) 0/1 bf16
    acc = jnp.float32(0.0)
    for p in range(tile_pw):                              # small static unroll
        col = cs_ref[0, :, p, :]                          # (OH_pad, OC) bf16
        pooled = jnp.dot(ph, col, preferred_element_type=jnp.float32)
        acc = acc + jnp.sum(pooled * pooled)
    out_ref[0, 0] = acc * scale


# ----------------------------------------------------------------------------
# Glue
# ----------------------------------------------------------------------------
def gabor_perceptual_loss(x, y, kernels, biases=None, *, pool_window=128,
                          pool_stride=1, batch_reduction='none',
                          tile_oh=None, tile_pw=None):
    del biases  # mirrors the PyTorch forward: biases loaded but never used
    assert x.shape == y.shape
    B, C, H, W = x.shape
    OC, Cw, KH, KW = kernels.shape
    assert Cw == C
    OH, OW = H - KH + 1, W - KW + 1
    win, stride = int(pool_window), int(pool_stride)
    if OH < win or OW < win:
        raise ValueError(
            f"pool_window={win} is larger than the conv output ({OH}x{OW})")
    PH = (OH - win) // stride + 1
    PW = (OW - win) // stride + 1
    CKK = C * KH * KW

    # ---- tiling -----------------------------------------------------------
    if tile_oh is None:
        tile_oh = max(1, (3 << 20) // (OW * CKK * 2))      # ~3 MiB bf16 / block
    tile_oh = max(8, (int(tile_oh) // 8) * 8)              # multiple of 8
    tile_oh = min(tile_oh, 16)                             # bound in-kernel unroll
    tile_oh = min(tile_oh, _round_up(OH, 8))
    OH_pad = _round_up(OH, tile_oh)
    n_toh = OH_pad // tile_oh
    TM = tile_oh * OW                                      # rows per conv matmul

    if tile_pw is None:
        tile_pw = max(1, (4 << 20) // (OH_pad * OC * 2))
    tile_pw = max(8, (int(tile_pw) // 8) * 8)
    tile_pw = min(tile_pw, 32)                             # bound in-kernel unroll
    tile_pw = min(tile_pw, _round_up(PW, 8))
    PW_pad = _round_up(PW, tile_pw)
    n_pw = PW_pad // tile_pw
    PH_pad = _round_up(PH, 8)

    # ---- host/XLA-side prep (bf16 for MXU & halved HBM bytes) -------------
    xb = x.astype(jnp.bfloat16)
    yb = y.astype(jnp.bfloat16)
    px = _im2col_nhwc(xb, KH, KW)                          # (B, OH, OW, CKK)
    py = _im2col_nhwc(yb, KH, KW)
    if OH_pad > OH:
        pad = ((0, 0), (0, OH_pad - OH), (0, 0), (0, 0))
        px = jnp.pad(px, pad)
        py = jnp.pad(py, pad)
    px = px.reshape(B * OH_pad * OW, CKK)
    py = py.reshape(B * OH_pad * OW, CKK)
    wt = kernels.astype(jnp.bfloat16).reshape(OC, CKK).T   # (CKK, OC)
    pw_mat = _band_matrix(PW_pad, OW, win, stride, PW, jnp.bfloat16)
    ph_mat = _band_matrix(PH_pad, OH_pad, win, stride, PH, jnp.bfloat16)

    # ---- kernel 1: conv + ReLU + diff + W-direction pooling ---------------
    k1 = functools.partial(_conv_relu_diff_wpool_kernel,
                           tile_oh=tile_oh, ow=OW, inv_win=1.0 / win)
    ocl = _round_up(OC, 128)
    vmem1 = (2 * 2 * TM * CKK * 2                          # px, py double-buffered
             + 2 * CKK * ocl * 2                           # weights
             + 2 * PW_pad * _round_up(OW, 128) * 2         # Pw
             + 2 * tile_oh * PW_pad * ocl * 2              # output block
             + 4 * TM * ocl * 4)                           # f32 temps
    vmem1 = int(min(max(vmem1 + (8 << 20), 32 << 20), 48 << 20))

    colsum = pl.pallas_call(
        k1,
        out_shape=jax.ShapeDtypeStruct((B, OH_pad, PW_pad, OC), jnp.bfloat16),
        grid=(B, n_toh),
        in_specs=[
            pl.BlockSpec((TM, CKK), lambda b, t: (b * n_toh + t, 0)),
            pl.BlockSpec((TM, CKK), lambda b, t: (b * n_toh + t, 0)),
            pl.BlockSpec((CKK, OC), lambda b, t: (0, 0)),
            pl.BlockSpec((PW_pad, OW), lambda b, t: (0, 0)),
        ],
        out_specs=pl.BlockSpec((1, tile_oh, PW_pad, OC),
                               lambda b, t: (b, t, 0, 0)),
        compiler_params=pltpu.CompilerParams(
            dimension_semantics=("parallel", "parallel"),
            vmem_limit_bytes=vmem1),
    )(px, py, wt, pw_mat)

    # ---- kernel 2: H-direction pooling + square + per-(b, tile) partials ---
    scale = 1.0 / (float(win) ** 2 * PH * PW * OC)
    k2 = functools.partial(_hpool_sq_partial_kernel, tile_pw=tile_pw, scale=scale)
    vmem2 = (2 * OH_pad * tile_pw * ocl * 2                # colsum blocks
             + 2 * PH_pad * _round_up(OH_pad, 128) * 2     # Ph
             + 4 * PH_pad * ocl * 4)                       # f32 temps
    vmem2 = int(min(max(vmem2 + (8 << 20), 32 << 20), 48 << 20))

    partials = pl.pallas_call(
        k2,
        out_shape=jax.ShapeDtypeStruct((B, n_pw), jnp.float32),
        grid=(B, n_pw),
        in_specs=[
            pl.BlockSpec((1, OH_pad, tile_pw, OC), lambda b, q: (b, 0, q, 0)),
            pl.BlockSpec((PH_pad, OH_pad), lambda b, q: (0, 0)),
        ],
        out_specs=pl.BlockSpec((1, 1), lambda b, q: (b, q),
                               memory_space=pltpu.MemorySpace.SMEM),
        compiler_params=pltpu.CompilerParams(
            dimension_semantics=("parallel", "parallel"),
            vmem_limit_bytes=vmem2),
    )(colsum, ph_mat)

    per_batch = jnp.sum(partials, axis=1)                  # tiny XLA reduction
    if batch_reduction == 'mean':
        return per_batch.mean()
    return per_batch                                       # shape (B,)


# ----------------------------------------------------------------------------
# Pure-JAX f32 reference (for sanity checking)
# ----------------------------------------------------------------------------
def _reference(x, y, kernels, win, stride):
    def feats(z):
        c = jax.lax.conv_general_dilated(
            z.astype(jnp.float32), kernels.astype(jnp.float32),
            window_strides=(1, 1), padding='VALID',
            dimension_numbers=('NCHW', 'OIHW', 'NCHW'))
        c = jnp.maximum(c, 0.0)
        s = jax.lax.reduce_window(
            c, 0.0, jax.lax.add, (1, 1, win, win), (1, 1, stride, stride),
            'VALID')
        return s / (win * win)

    d = (feats(x) - feats(y)) ** 2
    return d.reshape(x.shape[0], -1).mean(axis=1)


if __name__ == "__main__":
    key = jax.random.PRNGKey(0)
    kx, ky, kw_, kb = jax.random.split(key, 4)

    # AlexNet conv-1 shaped synthetic parameters (replaces torch.load).
    OC, C, KH, KW = 64, 3, 11, 11
    kernels = 0.1 * jax.random.normal(kw_, (OC, C, KH, KW), dtype=jnp.float32)
    biases = 0.01 * jax.random.normal(kb, (OC,), dtype=jnp.float32)  # unused

    # Config 1: exercises multi-tile grids in both kernels, OH/PW padding and
    # the XLA-side partial reduction.  (module default pool_window=128 would
    # need images >= 138px; shapes kept small here.)
    B, H, W = 2, 24, 24
    x = jax.random.normal(kx, (B, C, H, W), dtype=jnp.float32)
    y = jax.random.normal(ky, (B, C, H, W), dtype=jnp.float32)

    out = gabor_perceptual_loss(x, y, kernels, biases, pool_window=4,
                                pool_stride=1, tile_oh=8, tile_pw=8)
    out = jax.block_until_ready(out)
    ref = jax.block_until_ready(_reference(x, y, kernels, 4, 1))
    np.testing.assert_allclose(np.asarray(out), np.asarray(ref),
                               rtol=5e-2, atol=5e-3)

    out_mean = jax.block_until_ready(
        gabor_perceptual_loss(x, y, kernels, biases, pool_window=4,
                              pool_stride=1, tile_oh=8, tile_pw=8,
                              batch_reduction='mean'))
    np.testing.assert_allclose(np.asarray(out_mean), np.asarray(ref).mean(),
                               rtol=5e-2, atol=5e-3)

    # Config 2: strided pooling path (AvgPool2d(3, 2)), auto tiling.  The
    # stride is handled entirely by the band matrices (no strided indexing).
    x2 = jax.random.normal(jax.random.PRNGKey(1), (1, C, 18, 18),
                           dtype=jnp.float32)
    y2 = jax.random.normal(jax.random.PRNGKey(2), (1, C, 18, 18),
                           dtype=jnp.float32)
    out2 = jax.block_until_ready(
        gabor_perceptual_loss(x2, y2, kernels, biases,
                              pool_window=3, pool_stride=2))
    ref2 = jax.block_until_ready(_reference(x2, y2, kernels, 3, 2))
    np.testing.assert_allclose(np.asarray(out2), np.asarray(ref2),
                               rtol=5e-2, atol=5e-3)

    print("KERNEL_OK")
</pallas_src>

<mosaic_0001>
module attributes {stable_mosaic.version = 11 : i64} {
  func.func @_conv_relu_diff_wpool_kernel(%arg0: i32, %arg1: i32, %arg2: memref<112x363xbf16, #tpu.memory_space<vmem>>, %arg3: memref<112x363xbf16, #tpu.memory_space<vmem>>, %arg4: memref<363x64xbf16, #tpu.memory_space<vmem>>, %arg5: memref<16x14xbf16, #tpu.memory_space<vmem>>, %arg6: memref<1x8x16x64xbf16, #tpu.memory_space<vmem>>) attributes {dimension_semantics = [#tpu.dimension_semantics<parallel>, #tpu.dimension_semantics<parallel>], iteration_bounds = array<i64: 2, 2>, scalar_prefetch = 0 : i64, scratch_operands = 0 : i64, tpu.core_type = #tpu.core_type<tc>, window_params = [{transform_indices = @transform_0, window_bounds = array<i64: 112, 363>}, {transform_indices = @transform_1, window_bounds = array<i64: 112, 363>}, {pipeline_mode = #tpu.pipeline_mode<synchronous>, transform_indices = @transform_2, window_bounds = array<i64: 363, 64>}, {pipeline_mode = #tpu.pipeline_mode<synchronous>, transform_indices = @transform_3, window_bounds = array<i64: 16, 14>}, {transform_indices = @transform_4, window_bounds = array<i64: 1, 8, 16, 64>}]} {
    %c0 = arith.constant 0 : index
    %c0_0 = arith.constant 0 : index
    %0 = vector.load %arg4[%c0, %c0_0] : memref<363x64xbf16, #tpu.memory_space<vmem>>, vector<363x64xbf16>
    %c0_1 = arith.constant 0 : index
    %c0_2 = arith.constant 0 : index
    %1 = vector.load %arg2[%c0_1, %c0_2] : memref<112x363xbf16, #tpu.memory_space<vmem>>, vector<112x363xbf16>
    %cst = arith.constant dense<0.000000e+00> : vector<112x64xf32>
    %2 = tpu.matmul %1, %0, %cst {dimension_numbers = #tpu.dot_dimension_numbers<[1], [0], [0], [1], [0, 0, 1, 1], [], []>} : vector<112x363xbf16>, vector<363x64xbf16>, vector<112x64xf32> -> vector<112x64xf32>
    %c0_3 = arith.constant 0 : index
    %c0_4 = arith.constant 0 : index
    %3 = vector.load %arg3[%c0_3, %c0_4] : memref<112x363xbf16, #tpu.memory_space<vmem>>, vector<112x363xbf16>
    %cst_5 = arith.constant dense<0.000000e+00> : vector<112x64xf32>
    %4 = tpu.matmul %3, %0, %cst_5 {dimension_numbers = #tpu.dot_dimension_numbers<[1], [0], [0], [1], [0, 0, 1, 1], [], []>} : vector<112x363xbf16>, vector<363x64xbf16>, vector<112x64xf32> -> vector<112x64xf32>
    %cst_6 = arith.constant 0.000000e+00 : f32
    %5 = vector.broadcast %cst_6 : f32 to vector<112x64xf32>
    %6 = arith.maximumf %2, %5 : vector<112x64xf32>
    %cst_7 = arith.constant 0.000000e+00 : f32
    %7 = vector.broadcast %cst_7 : f32 to vector<112x64xf32>
    %8 = arith.maximumf %4, %7 : vector<112x64xf32>
    %9 = arith.subf %6, %8 : vector<112x64xf32>
    %cst_8 = arith.constant 2.500000e-01 : f32
    %10 = vector.broadcast %cst_8 : f32 to vector<112x64xf32>
    %11 = arith.mulf %9, %10 : vector<112x64xf32>
    %12 = arith.truncf %11 : vector<112x64xf32> to vector<112x64xbf16>
    %c0_9 = arith.constant 0 : index
    %c0_10 = arith.constant 0 : index
    %13 = vector.load %arg5[%c0_9, %c0_10] : memref<16x14xbf16, #tpu.memory_space<vmem>>, vector<16x14xbf16>
    %14 = vector.extract_strided_slice %12 {offsets = [0, 0], sizes = [14, 64], strides = [1, 1]} : vector<112x64xbf16> to vector<14x64xbf16>
    %cst_11 = arith.constant dense<0.000000e+00> : vector<16x64xf32>
    %15 = tpu.matmul %13, %14, %cst_11 {dimension_numbers = #tpu.dot_dimension_numbers<[1], [0], [0], [1], [0, 0, 1, 1], [], []>} : vector<16x14xbf16>, vector<14x64xbf16>, vector<16x64xf32> -> vector<16x64xf32>
    %16 = arith.truncf %15 : vector<16x64xf32> to vector<16x64xbf16>
    %c0_12 = arith.constant 0 : index
    %c0_13 = arith.constant 0 : index
    %c0_14 = arith.constant 0 : index
    %c0_15 = arith.constant 0 : index
    %17 = vector.load %arg6[%c0_12, %c0_13, %c0_14, %c0_15] : memref<1x8x16x64xbf16, #tpu.memory_space<vmem>>, vector<1x1x16x64xbf16>
    %18 = vector.shape_cast %17 : vector<1x1x16x64xbf16> to vector<16x64xbf16>
    %19 = vector.shape_cast %16 : vector<16x64xbf16> to vector<1x1x16x64xbf16>
    tpu.vector_store %arg6[%c0_12, %c0_13, %c0_14, %c0_15], %19 {strides = array<i32>} : memref<1x8x16x64xbf16, #tpu.memory_space<vmem>>, vector<1x1x16x64xbf16>,
    %20 = vector.extract_strided_slice %12 {offsets = [14, 0], sizes = [14, 64], strides = [1, 1]} : vector<112x64xbf16> to vector<14x64xbf16>
    %cst_16 = arith.constant dense<0.000000e+00> : vector<16x64xf32>
    %21 = tpu.matmul %13, %20, %cst_16 {dimension_numbers = #tpu.dot_dimension_numbers<[1], [0], [0], [1], [0, 0, 1, 1], [], []>} : vector<16x14xbf16>, vector<14x64xbf16>, vector<16x64xf32> -> vector<16x64xf32>
    %22 = arith.truncf %21 : vector<16x64xf32> to vector<16x64xbf16>
    %c0_17 = arith.constant 0 : index
    %c1 = arith.constant 1 : index
    %c0_18 = arith.constant 0 : index
    %c0_19 = arith.constant 0 : index
    %23 = vector.load %arg6[%c0_17, %c1, %c0_18, %c0_19] : memref<1x8x16x64xbf16, #tpu.memory_space<vmem>>, vector<1x1x16x64xbf16>
    %24 = vector.shape_cast %23 : vector<1x1x16x64xbf16> to vector<16x64xbf16>
    %25 = vector.shape_cast %22 : vector<16x64xbf16> to vector<1x1x16x64xbf16>
    tpu.vector_store %arg6[%c0_17, %c1, %c0_18, %c0_19], %25 {strides = array<i32>} : memref<1x8x16x64xbf16, #tpu.memory_space<vmem>>, vector<1x1x16x64xbf16>,
    %26 = vector.extract_strided_slice %12 {offsets = [28, 0], sizes = [14, 64], strides = [1, 1]} : vector<112x64xbf16> to vector<14x64xbf16>
    %cst_20 = arith.constant dense<0.000000e+00> : vector<16x64xf32>
    %27 = tpu.matmul %13, %26, %cst_20 {dimension_numbers = #tpu.dot_dimension_numbers<[1], [0], [0], [1], [0, 0, 1, 1], [], []>} : vector<16x14xbf16>, vector<14x64xbf16>, vector<16x64xf32> -> vector<16x64xf32>
    %28 = arith.truncf %27 : vector<16x64xf32> to vector<16x64xbf16>
    %c0_21 = arith.constant 0 : index
    %c2 = arith.constant 2 : index
    %c0_22 = arith.constant 0 : index
    %c0_23 = arith.constant 0 : index
    %29 = vector.load %arg6[%c0_21, %c2, %c0_22, %c0_23] : memref<1x8x16x64xbf16, #tpu.memory_space<vmem>>, vector<1x1x16x64xbf16>
    %30 = vector.shape_cast %29 : vector<1x1x16x64xbf16> to vector<16x64xbf16>
    %31 = vector.shape_cast %28 : vector<16x64xbf16> to vector<1x1x16x64xbf16>
    tpu.vector_store %arg6[%c0_21, %c2, %c0_22, %c0_23], %31 {strides = array<i32>} : memref<1x8x16x64xbf16, #tpu.memory_space<vmem>>, vector<1x1x16x64xbf16>,
    %32 = vector.extract_strided_slice %12 {offsets = [42, 0], sizes = [14, 64], strides = [1, 1]} : vector<112x64xbf16> to vector<14x64xbf16>
    %cst_24 = arith.constant dense<0.000000e+00> : vector<16x64xf32>
    %33 = tpu.matmul %13, %32, %cst_24 {dimension_numbers = #tpu.dot_dimension_numbers<[1], [0], [0], [1], [0, 0, 1, 1], [], []>} : vector<16x14xbf16>, vector<14x64xbf16>, vector<16x64xf32> -> vector<16x64xf32>
    %34 = arith.truncf %33 : vector<16x64xf32> to vector<16x64xbf16>
    %c0_25 = arith.constant 0 : index
    %c3 = arith.constant 3 : index
    %c0_26 = arith.constant 0 : index
    %c0_27 = arith.constant 0 : index
    %35 = vector.load %arg6[%c0_25, %c3, %c0_26, %c0_27] : memref<1x8x16x64xbf16, #tpu.memory_space<vmem>>, vector<1x1x16x64xbf16>
    %36 = vector.shape_cast %35 : vector<1x1x16x64xbf16> to vector<16x64xbf16>
    %37 = vector.shape_cast %34 : vector<16x64xbf16> to vector<1x1x16x64xbf16>
    tpu.vector_store %arg6[%c0_25, %c3, %c0_26, %c0_27], %37 {strides = array<i32>} : memref<1x8x16x64xbf16, #tpu.memory_space<vmem>>, vector<1x1x16x64xbf16>,
    %38 = vector.extract_strided_slice %12 {offsets = [56, 0], sizes = [14, 64], strides = [1, 1]} : vector<112x64xbf16> to vector<14x64xbf16>
    %cst_28 = arith.constant dense<0.000000e+00> : vector<16x64xf32>
    %39 = tpu.matmul %13, %38, %cst_28 {dimension_numbers = #tpu.dot_dimension_numbers<[1], [0], [0], [1], [0, 0, 1, 1], [], []>} : vector<16x14xbf16>, vector<14x64xbf16>, vector<16x64xf32> -> vector<16x64xf32>
    %40 = arith.truncf %39 : vector<16x64xf32> to vector<16x64xbf16>
    %c0_29 = arith.constant 0 : index
    %c4 = arith.constant 4 : index
    %c0_30 = arith.constant 0 : index
    %c0_31 = arith.constant 0 : index
    %41 = vector.load %arg6[%c0_29, %c4, %c0_30, %c0_31] : memref<1x8x16x64xbf16, #tpu.memory_space<vmem>>, vector<1x1x16x64xbf16>
    %42 = vector.shape_cast %41 : vector<1x1x16x64xbf16> to vector<16x64xbf16>
    %43 = vector.shape_cast %40 : vector<16x64xbf16> to vector<1x1x16x64xbf16>
    tpu.vector_store %arg6[%c0_29, %c4, %c0_30, %c0_31], %43 {strides = array<i32>} : memref<1x8x16x64xbf16, #tpu.memory_space<vmem>>, vector<1x1x16x64xbf16>,
    %44 = vector.extract_strided_slice %12 {offsets = [70, 0], sizes = [14, 64], strides = [1, 1]} : vector<112x64xbf16> to vector<14x64xbf16>
    %cst_32 = arith.constant dense<0.000000e+00> : vector<16x64xf32>
    %45 = tpu.matmul %13, %44, %cst_32 {dimension_numbers = #tpu.dot_dimension_numbers<[1], [0], [0], [1], [0, 0, 1, 1], [], []>} : vector<16x14xbf16>, vector<14x64xbf16>, vector<16x64xf32> -> vector<16x64xf32>
    %46 = arith.truncf %45 : vector<16x64xf32> to vector<16x64xbf16>
    %c0_33 = arith.constant 0 : index
    %c5 = arith.constant 5 : index
    %c0_34 = arith.constant 0 : index
    %c0_35 = arith.constant 0 : index
    %47 = vector.load %arg6[%c0_33, %c5, %c0_34, %c0_35] : memref<1x8x16x64xbf16, #tpu.memory_space<vmem>>, vector<1x1x16x64xbf16>
    %48 = vector.shape_cast %47 : vector<1x1x16x64xbf16> to vector<16x64xbf16>
    %49 = vector.shape_cast %46 : vector<16x64xbf16> to vector<1x1x16x64xbf16>
    tpu.vector_store %arg6[%c0_33, %c5, %c0_34, %c0_35], %49 {strides = array<i32>} : memref<1x8x16x64xbf16, #tpu.memory_space<vmem>>, vector<1x1x16x64xbf16>,
    %50 = vector.extract_strided_slice %12 {offsets = [84, 0], sizes = [14, 64], strides = [1, 1]} : vector<112x64xbf16> to vector<14x64xbf16>
    %cst_36 = arith.constant dense<0.000000e+00> : vector<16x64xf32>
    %51 = tpu.matmul %13, %50, %cst_36 {dimension_numbers = #tpu.dot_dimension_numbers<[1], [0], [0], [1], [0, 0, 1, 1], [], []>} : vector<16x14xbf16>, vector<14x64xbf16>, vector<16x64xf32> -> vector<16x64xf32>
    %52 = arith.truncf %51 : vector<16x64xf32> to vector<16x64xbf16>
    %c0_37 = arith.constant 0 : index
    %c6 = arith.constant 6 : index
    %c0_38 = arith.constant 0 : index
    %c0_39 = arith.constant 0 : index
    %53 = vector.load %arg6[%c0_37, %c6, %c0_38, %c0_39] : memref<1x8x16x64xbf16, #tpu.memory_space<vmem>>, vector<1x1x16x64xbf16>
    %54 = vector.shape_cast %53 : vector<1x1x16x64xbf16> to vector<16x64xbf16>
    %55 = vector.shape_cast %52 : vector<16x64xbf16> to vector<1x1x16x64xbf16>
    tpu.vector_store %arg6[%c0_37, %c6, %c0_38, %c0_39], %55 {strides = array<i32>} : memref<1x8x16x64xbf16, #tpu.memory_space<vmem>>, vector<1x1x16x64xbf16>,
    %56 = vector.extract_strided_slice %12 {offsets = [98, 0], sizes = [14, 64], strides = [1, 1]} : vector<112x64xbf16> to vector<14x64xbf16>
    %cst_40 = arith.constant dense<0.000000e+00> : vector<16x64xf32>
    %57 = tpu.matmul %13, %56, %cst_40 {dimension_numbers = #tpu.dot_dimension_numbers<[1], [0], [0], [1], [0, 0, 1, 1], [], []>} : vector<16x14xbf16>, vector<14x64xbf16>, vector<16x64xf32> -> vector<16x64xf32>
    %58 = arith.truncf %57 : vector<16x64xf32> to vector<16x64xbf16>
    %c0_41 = arith.constant 0 : index
    %c7 = arith.constant 7 : index
    %c0_42 = arith.constant 0 : index
    %c0_43 = arith.constant 0 : index
    %59 = vector.load %arg6[%c0_41, %c7, %c0_42, %c0_43] : memref<1x8x16x64xbf16, #tpu.memory_space<vmem>>, vector<1x1x16x64xbf16>
    %60 = vector.shape_cast %59 : vector<1x1x16x64xbf16> to vector<16x64xbf16>
    %61 = vector.shape_cast %58 : vector<16x64xbf16> to vector<1x1x16x64xbf16>
    tpu.vector_store %arg6[%c0_41, %c7, %c0_42, %c0_43], %61 {strides = array<i32>} : memref<1x8x16x64xbf16, #tpu.memory_space<vmem>>, vector<1x1x16x64xbf16>,
    return
  }
  func.func @transform_0(%arg0: i32, %arg1: i32) -> (i32, i32) {
    %c2_i32 = arith.constant 2 : i32
    %0 = arith.muli %arg0, %c2_i32 : i32
    %1 = arith.addi %0, %arg1 : i32
    %c0_i32 = arith.constant 0 : i32
    %c0_i32_0 = arith.constant 0 : i32
    return %1, %c0_i32 : i32, i32
  }
  func.func @transform_1(%arg0: i32, %arg1: i32) -> (i32, i32) {
    %c2_i32 = arith.constant 2 : i32
    %0 = arith.muli %arg0, %c2_i32 : i32
    %1 = arith.addi %0, %arg1 : i32
    %c0_i32 = arith.constant 0 : i32
    %c0_i32_0 = arith.constant 0 : i32
    return %1, %c0_i32 : i32, i32
  }
  func.func @transform_2(%arg0: i32, %arg1: i32) -> (i32, i32) {
    %c0_i32 = arith.constant 0 : i32
    %c0_i32_0 = arith.constant 0 : i32
    %c0_i32_1 = arith.constant 0 : i32
    return %c0_i32, %c0_i32_0 : i32, i32
  }
  func.func @transform_3(%arg0: i32, %arg1: i32) -> (i32, i32) {
    %c0_i32 = arith.constant 0 : i32
    %c0_i32_0 = arith.constant 0 : i32
    %c0_i32_1 = arith.constant 0 : i32
    return %c0_i32, %c0_i32_0 : i32, i32
  }
  func.func @transform_4(%arg0: i32, %arg1: i32) -> (i32, i32, i32, i32) {
    %c0_i32 = arith.constant 0 : i32
    %c0_i32_0 = arith.constant 0 : i32
    %c0_i32_1 = arith.constant 0 : i32
    return %arg0, %arg1, %c0_i32, %c0_i32_0 : i32, i32, i32, i32
  }
}

</mosaic_0001>

<bundles_post_ra>
// kernel: tpu_custom_call.1
= control target key start
LH: loop header
LB: loop body
LE: loop exit
PB: predicated region body
PF: predicated region fallthrough
CT: control target
= control target key end

     0   :  { %s3385_s0 = inlined_call_operand.hbm [shape: bf16[448,363], index: 0, kind: input, shape index: {}]   ;;  %s3386_s1 = inlined_call_operand.hbm [shape: bf16[448,363], index: 1, kind: input, shape index: {}]   ;;  %s3387_s2 = inlined_call_operand.vmem [shape: bf16[363,64], index: 2, kind: input, shape index: {}]   ;;  %s3388_s3 = inlined_call_operand.vmem [shape: bf16[16,14], index: 3, kind: input, shape index: {}]   ;;  %s3389_s4 = inlined_call_operand.hbm [shape: bf16[2,16,16,64], index: 4, kind: output, shape index: {}]  }
   0x1   :  { %3397 = sst [smem:[#allocation19_spill]] %s3385_s0 }
   0x2   :  { %9 = vsyncpa [#allocation3], 0 }
   0x3   :  { %11 = vsyncpa [#allocation3 + $0x1], 0 }
   0x4   :  { %12 = vsyncpa [#allocation6], 0 }
   0x5   :  { %14 = vsyncpa [#allocation6 + $0x1], 0 }
   0x6   :  { %15 = vsyncpa [#allocation4], 0 }
   0x7   :  { %17 = vsyncpa [#allocation4 + $0x1], 0  ;;  %s2691_s15 = smov 0   ;;  %s2693_s16 = smov 0  }
   0x8   :  { %s2695_s17 = smov 0   ;;  %s2697_s18 = smov 0  }
   0x9   :  { %s2699_s19 = smov 0   ;;  %s2701_s20 = smov 0  }
   0xa   :  { %s2703_s21 = smov 0   ;;  %s2705_s22 = smov 0  }
   0xb   :  { %s2707_s23 = smov 0   ;;  %s2709_s24 = smov 0  }
   0xc   :  { %s2711_s25 = smov 0  }
   0xd LB: > { %3398 = sst [smem:[#allocation11_spill]] %s2622_s17  ;;  %s1825_s26 = sadd.s32 4294967295, %s2654_s25   ;;  %s2654_s25 = sphi %s2711_s25, %s23_s25   ;;  %s2650_s24 = sphi %s2709_s24, %s3422_s24   ;;  %s2646_s23 = sphi %s2707_s23, %s3421_s23   ;;  %s2642_s22 = sphi %s2705_s22, %s3420_s22   ;;  %s2638_s21 = sphi %s2703_s21, %s3419_s21   ;;  %s2634_s20 = sphi %s2701_s20, %s3427_s20   ;;  %s2630_s19 = sphi %s2699_s19, %s3426_s19   ;;  %s2626_s18 = sphi %s2697_s18, %s3425_s18   ;;  %s2622_s17 = sphi %s2695_s17, %s3416_s17   ;;  %s2618_s16 = sphi %s2693_s16, %s3424_s16   ;;  %s2614_s15 = sphi %s2691_s15, %s3423_s15  }
   0xe   : > { %3399 = sst [smem:[#allocation12_spill]] %s2634_s20  ;;  %s32_s28 = sadd.s32 1, %s2646_s23 }
   0xf   : > { %3400 = sst [smem:[#allocation13_spill]] %s2646_s23  ;;  %s35_s29 = sadd.s32 1, %s2650_s24 }
  0x10   : > { %3401 = sst [smem:[#allocation14_spill]] %s2650_s24  ;;  %p33_p0 = scmp.ge.s32.totalorder %s32_s28, 2 }
  0x11   : > { %s1827_s30 = sshll.u32 %s2650_s24, 1  ;;  %s46_s6 = sadd.s32 1, %s2634_s20 }
  0x12   : > { %s2750_s5 = sadd.s32 %s2646_s23, %s1827_s30  ;;  %s3429_s28 = smov (%p33_p0, %s32_s28), 0 }
  0x13   : > { %3402 = sst [smem:[#allocation15_spill]] %s3429_s28  ;;  %s3431_s29 = smov (!%p33_p0, %s35_s29), %s2650_s24 }
  0x14   : > { %p53_p1 = scmp.ne.s32.totalorder %s2634_s20, %s2630_s19  ;;  %p54_p2 = scmp.eq.s32.totalorder %s2654_s25, 0 }
  0x15   : > { %p37_p3 = scmp.ge.s32.totalorder %s3431_s29, 2  ;;  %p59_p4 = scmp.ne.s32.totalorder %s2630_s19, %s2626_s18 }
  0x16   : > { %p2760_p5 = por %p54_p2, %p53_p1  ;;  %p60_p6 = scmp.eq.s32.totalorder %s1825_s26, 0 }
  0x17   : > { %s3433_s29 = smov (%p37_p3, %s3431_s29), 0  ;;  %s142_s9 = ssub.s32 %s2646_s23, %s3429_s28 }
  0x18   : > { %3404 = sst [smem:[#allocation16_spill]] %s3433_s29  ;;  %p2768_p7 = por %p60_p6, %p59_p4 }
  0x19   : > { %s1828_s10 = sshll.u32 %s3433_s29, 1  ;;  %s141_s11 = ssub.s32 %s2650_s24, %s3433_s29 }
  0x1a   : > { %s42_s12 = sadd.s32 %s1828_s10, %s3429_s28  ;;  %s143_s13 = sor.u32 %s142_s9, %s141_s11 }
  0x1b   : > { %s43_s14 = ssub.s32 %s2750_s5, %s42_s12  ;;  %p144_p8 = scmp.eq.s32.totalorder %s143_s13, 0 }
  0x1c   : > { %p44_p9 = scmp.eq.s32.totalorder %s43_s14, 0  ;;  %s146_s18 = sadd.s32 1, %s2622_s17 }
  0x1d   : > { %s2781_s30 = scalar_select %p144_p8, %s2622_s17, %s146_s18  }
  0x1e   : > { %s2784_s27 = scalar_select %p44_p9, %s2634_s20, %s46_s6  }
  0x1f   : > { %3406 = sst [smem:[#allocation17_spill]] %s2781_s30  ;;  %p156_p10 = scmp.ne.s32.totalorder %s2622_s17, %s2618_s16 }
  0x20   : > { %3407 = sst [smem:[#allocation18_spill]] %s2784_s27  ;;  %p157_p11 = scmp.eq.s32.totalorder %s1825_s26, 3 }
  0x21   : > { %p162_p12 = scmp.ne.s32.totalorder %s2618_s16, %s2614_s15  ;;  %s3408_s29 = sadd.s32 4294967294, %s2654_s25  }
  0x22   : > { %p163_p13 = scmp.eq.s32.totalorder %s3408_s29, 3  ;;  %p2794_p0 = por %p157_p11, %p156_p10 }
  0x23   : > { %p2295_p2 = scmp.lt.s32.totalorder %s2654_s25, 4  ;;  %s2804_s11 = sand.u32 1, %s2634_s20  }
  0x24   : > { %p2798_p1 = por %p163_p13, %p162_p12  ;;  %s3394_s6 = smul.u32 168, %s2804_s11 }
  0x25   : > { %s2296_s12 = smul.u32 2688, %s2750_s5  ;;  %p2810_p3 = pnand %p2295_p2, %p2760_p5 }
  0x26   : > { %s3412_s0 = sld [smem:[#allocation19_spill]]  ;;  %s193_s18 = scalar_lea.vmem [#allocation2], %s3394_s6 }
  0x27   : > { %s203_s28 = sshll.u32 %s193_s18, 4  ;;  %p1837_p4 = scmp.ge.s32.totalorder %s2654_s25, 1  ;;  %s204_s28 = int_to_ptr.vmem [resolvable:$true] %s203_s28 }
  0x28   : > { %s190_s24 = scalar_lea.sflag [#allocation3], %s2804_s11  ;;  %p2476_p6 = pneg %p2810_p3 }
  0x29   : > { %s2487_s7 = scalar_lea.vmem %s204_s28, 2688  ;;  %s2656_s23 = smov [#allocation2]  }
  0x2a   : > { %p2488_p5 = scmp.ne.s32.totalorder %s204_s28, %s2487_s7  ;;  %s2492_s27 = sshll.u32 %s2656_s23, 4  ;;  %s2493_s27 = int_to_ptr.vmem [resolvable:$false] %s2492_s27 }
  0x2b   : > { %s2494_s29 = scalar_lea.vmem %s2493_s27, 5376  ;;  %p2495_p10 = scmp.lt.s32.totalorder %s204_s28, %s2493_s27 }
  0x2c   : > { %s202_s14 = scalar_lea.hbm %s3412_s0, %s2296_s12  ;;  %p2490_p8 = pnand %p2488_p5, %p2476_p6 }
  0x2d   : > { %p2496_p11 = scmp.lt.s32.totalorder %s2494_s29, %s2487_s7 }
  0x2e   : > { %p2491_p9 = pneg %p2490_p8 }
  0x2f   : > { %p2497_p12 = por %p2496_p11, %p2495_p10 }
  0x31   : > { %p2498_p13 = pnand %p2497_p12, %p2491_p9 }
  0x33   : > { %2501 = shalt.err (!%p2498_p13)
}
  0x34   : > { %s2657_s13 = smov 192   ;;  %s2658_s18 = smov 12  }
  0x35   : > { %2287 = dma.hbm_to_vmem [thread:$0]  (!%p2810_p3), %s202_s14, 2688, %s204_s28, %s190_s24, %s2657_s13, %s2657_s13, %s2658_s18  }
  0x36   : > { %p235_p2 = scmp.lt.s32.totalorder %s2654_s25, 5  ;;  %s226_s27 = scalar_lea.hbm %s3386_s1, %s2296_s12 }
  0x37   : > { %s3414_s29 = smul.u32 168, %s2804_s11  ;;  %s214_s30 = scalar_lea.sflag [#allocation6], %s2804_s11 }
  0x38   : > { %p2838_p5 = pnand %p1837_p4, %p235_p2  ;;  %s2659_s24 = smov [#allocation5]  }
  0x39   : > { %s217_s0 = scalar_lea.vmem [#allocation5], %s3414_s29  ;;  %s2520_s28 = sshll.u32 %s2659_s24, 4  ;;  %s2521_s28 = int_to_ptr.vmem [resolvable:$false] %s2520_s28 }
  0x3a   : > { %s227_s20 = sshll.u32 %s217_s0, 4  ;;  %s2522_s5 = scalar_lea.vmem %s2521_s28, 5376  ;;  %s228_s20 = int_to_ptr.vmem [resolvable:$true] %s227_s20 }
  0x3b   : > { %s2515_s17 = scalar_lea.vmem %s228_s20, 2688  ;;  %p2523_p11 = scmp.lt.s32.totalorder %s228_s20, %s2521_s28 }
  0x3c   : > { %p2516_p8 = scmp.ne.s32.totalorder %s228_s20, %s2515_s17  ;;  %p2524_p4 = scmp.lt.s32.totalorder %s2522_s5, %s2515_s17 }
  0x3e   : > { %p2518_p9 = pnand %p2516_p8, %p2476_p6  ;;  %p2525_p12 = por %p2524_p4, %p2523_p11 }
  0x40   : > { %p2519_p10 = pneg %p2518_p9 }
  0x42   : > { %p2526_p13 = pnand %p2525_p12, %p2519_p10 }
  0x44   : > { %2529 = shalt.err (!%p2526_p13)
}
  0x45   : > { %2290 = dma.hbm_to_vmem [thread:$0]  (!%p2810_p3), %s226_s27, 2688, %s228_s20, %s214_s30, %s2657_s13, %s2657_s13, %s2658_s18  }
  0x46   : > { %239 = sbr.rel (%p2838_p5) target bundleno = 646 (0x286), region = 36  ;;  %s241_s0 = sand.u32 (!%p2838_p5), 1, %s2630_s19  }
  0x47   : > { %s2277_s11 = smul.u32 (!%p2838_p5), 168, %s241_s0  ;;  %s242_s6 = scalar_lea.sflag (!%p2838_p5), [#allocation3], %s241_s0 }
  0x49   : > { %s2853_s12 = scalar_lea.vmem (!%p2838_p5), [#allocation2], %s2277_s11 }
  0x4b   : > { %2601 = dma.done.wait (%p2768_p7), %s242_s6, 2688  }
  0x4c   : > { %2603 = vsyncadd (%p2768_p7), %s242_s6, 4294964608  ;;  %s251_s17 = scalar_lea.sflag [#allocation6], %s241_s0  ;;  %s2859_s14 = scalar_lea.vmem [#allocation5], %s2277_s11 }
  0x4d   : > { %2605 = dma.done.wait (%p2768_p7), %s251_s17, 2688  }
  0x4e   : > { %2607 = vsyncadd (%p2768_p7), %s251_s17, 4294964608  ;;  %v2660_v0 = vmov 0.0   ;;  %vm630_vm0 = vcmask 1044480   ;;  %vm2661_vm1 = vmmov 0   ;;  %vm631_vm2 = vcmask 1045504   ;;  %v2394_v3 = vld [vmem:[%s3387_s2 + $0x78] sm:$0xff]  }
  0x4f   : > { %2141 = vmatprep.subr.bf16.mxu1 %v2660_v0  ;;  %2155 = vmatprep.mubr.msk.bf16.mxu1 %vm2661_vm1, %v2660_v0  ;;  %v2662_v1 = vmov 65535   ;;  %v2875_v4 = vld [vmem:[%s3387_s2 + $0x38] sm:$0xff]   ;;  %v2396_v6 = vld [vmem:[%s3387_s2 + $0xb0] sm:$0x3f]   ;;  %v2893_v10 = vld [vmem:[%s3387_s2 + $0xa8] sm:$0xff]   ;;  %vm608_vm3 = vcmask 875520  }
  0x50   : > { %v632_v2 = vsel %vm630_vm0, 4294967295, %v2662_v1  ;;  %1981 = vmatprep.subr.bf16.mxu0 %v2394_v3  ;;  %v2397_v7 = vld [vmem:[%s3387_s2 + $0x70] sm:$0xff]   ;;  %v2400_v11 = vld [vmem:[%s3387_s2 + $0x68] sm:$0xff]   ;;  %v2908_v13 = vld [vmem:[%s3387_s2 + $0x60] sm:$0xff]   ;;  %vm1221_vm4 = vcmask 1046528   ;;  %vm1217_vm5 = vcmask 113664  }
  0x51   : > { %v633_v5 = vsel %vm631_vm2, %v632_v2, 0  ;;  %1982 = vmatpush3.bf16.msra.mxu0 %v2875_v4  ;;  %v2888_v9 = vld [vmem:[%s3387_s2 + $0x30] sm:$0xff]   ;;  %v2903_v12 = vld [vmem:[%s3387_s2 + $0x28] sm:$0xff]   ;;  %v2914_v14 = vld [vmem:[%s3387_s2 + $0xa0] sm:$0xff]   ;;  %vm1279_vm6 = vcmask 1040384   ;;  %vm1339_vm7 = vcmask 1041408  }
  0x52   : > { %v635_v8 = vand.u32 %v2396_v6, %v633_v5  ;;  %1983 = vmatprep.subr.bf16.mxu0 %v2397_v7  ;;  %v2921_v15 = vld [vmem:[%s3387_s2 + $0x20] sm:$0xff]   ;;  %v2927_v16 = vld [vmem:[%s3387_s2 + $0x58] sm:$0xff]   ;;  %v2946_v19 = vld [vmem:[%s3387_s2 + $0x50] sm:$0xff]   ;;  %vm1399_vm8 = vcmask 1042432   ;;  %vm1459_vm9 = vcmask 1043456   ;;  %s281_s5 = sand.u32 1, %s2618_s16  }
  0x53   : > { %v2933_v17 = vld [vmem:[%s3387_s2 + $0x98] sm:$0xff]   ;;  %v2952_v20 = vld [vmem:[%s3387_s2 + $0x90] sm:$0xff]   ;;  %v2965_v22 = vld [vmem:[%s3387_s2 + $0x48] sm:$0xff]   ;;  %s1838_s0 = sshll.u32 %s281_s5, 6  ;;  %vm1274_vm10 = vcmask 519168   ;;  %s1980_s6 = sshll.u32 %s2638_s21, 4 }
  0x54   : > { %2142 = vmatpush3.bf16.msra.mxu1 %v635_v8  ;;  %v2940_v18 = vld [vmem:[%s3387_s2 + $0x18] sm:$0xff]   ;;  %v2959_v21 = vld [vmem:[%s3387_s2 + $0x10] sm:$0xff]   ;;  %v2971_v23 = vld [vmem:[%s3387_s2 + $0x88] sm:$0xff]   ;;  %s3279_s11 = scalar_lea.vmem [#allocation7], %s1838_s0  ;;  %s1960_s17 = sshll.u32 %s2642_s22, 5 }
  0x55   : > { %1984 = vmatpush3.bf16.msra.mxu0 %v2888_v9  ;;  %2143 = vmatprep.subr.bf16.mxu1 %v2660_v0  ;;  %v2978_v24 = vld [vmem:[%s3387_s2 + $0x8] sm:$0xff]   ;;  %v2984_v25 = vld [vmem:[%s3387_s2 + $0x40] sm:$0xff]   ;;  %s1708_s20 = sadd.s32 %s1980_s6, %s1960_s17  ;;  %s1711_s26 = sshll.u32 %s3279_s11, 4  ;;  %s3317_s26 = int_to_ptr.vmem [resolvable:$true] %s1711_s26 }
  0x56   : > { %1985 = vmatprep.subr.bf16.mxu0 %v2400_v11  ;;  %v2420_v26 = vld [vmem:[%s2853_s12 + $0x4] ss:$12 sps:$4 sm:$0xff]   ;;  %v2417_v29 = vld [vmem:[%s2853_s12 + $0x8] ss:$12 sps:$4 sm:$0xff]   ;;  %v2418_v30 = vld [vmem:[%s2853_s12] ss:$12 sps:$4 sm:$0xff]  }
  0x57   : > { %v2991_v27 = vld [vmem:[%s3387_s2 + $0x80] sm:$0xff]   ;;  %669 = vmatprep.mubr.bf16.mxu0 %v2420_v26  ;;  %v2432_v39 = vld [vmem:[%s2853_s12 + $0x48] ss:$12 sps:$4 sm:$0xff]   ;;  %s1961_s30 = sshll.u32 %s1708_s20, 6  ;;  %s3325_s8 = scalar_lea.sflag [#allocation4], %s281_s5 }
  0x58   : > { %2144 = vmatpush3.bf16.msra.mxu1 %v2893_v10  ;;  %v2998_v28 = vld [vmem:[%s3387_s2] sm:$0xff]   ;;  %v2433_v41 = vld [vmem:[%s2853_s12 + $0x68] ss:$12 sps:$4 sm:$0xff]   ;;  %s3315_s13 = scalar_lea.hbm %s3389_s4, %s1961_s30  ;;  %s2530_s18 = scalar_lea.vmem %s3317_s26, 1024 }
  0x59   : > { %1986 = vmatpush3.bf16.msra.mxu0 %v2903_v12  ;;  %2145 = vmatprep.subr.bf16.mxu1 %v2660_v0  ;;  %v2422_v31 = vld [vmem:[%s2853_s12 + $0x1c] ss:$12 sps:$4 sm:$0xff]   ;;  %v2421_v32 = vld [vmem:[%s2853_s12 + $0x20] ss:$12 sps:$4 sm:$0xff]   ;;  %v2424_v33 = vld [vmem:[%s2853_s12 + $0x18] ss:$12 sps:$4 sm:$0xff]   ;;  %p2531_p7 = scmp.ne.s32.totalorder %s3317_s26, %s2530_s18 }
  0x5a   : > { %1987 = vmatprep.subr.bf16.mxu0 %v2908_v13  ;;  %v2426_v34 = vld [vmem:[%s2853_s12 + $0x34] ss:$12 sps:$4 sm:$0xff]   ;;  %v2425_v35 = vld [vmem:[%s2853_s12 + $0x38] ss:$12 sps:$4 sm:$0xff]   ;;  %v2428_v36 = vld [vmem:[%s2853_s12 + $0x30] ss:$12 sps:$4 sm:$0xff]  }
  0x5b   : > { %v2430_v37 = vld [vmem:[%s2853_s12 + $0x4c] ss:$12 sps:$4 sm:$0xff]   ;;  %v2429_v38 = vld [vmem:[%s2853_s12 + $0x50] ss:$12 sps:$4 sm:$0xff]   ;;  %v2442_v46 = vld [vmem:[%s2853_s12 + $0x94] ss:$12 sps:$4 sm:$0xff]   ;;  %p2532_p3 = pnand %p2531_p7, %p2794_p0 }
  0x5c   : > { %2146 = vmatpush3.bf16.msra.mxu1 %v2914_v14  ;;  %v2434_v40 = vld [vmem:[%s2853_s12 + $0x64] ss:$12 sps:$4 sm:$0xff]   ;;  %v2436_v42 = vld [vmem:[%s2853_s12 + $0x60] ss:$12 sps:$4 sm:$0xff]   ;;  %v2438_v43 = vld [vmem:[%s2853_s12 + $0x7c] ss:$12 sps:$4 sm:$0xff]  }
  0x5d   : > { %1988 = vmatpush3.bf16.msra.mxu0 %v2921_v15  ;;  %2147 = vmatprep.subr.bf16.mxu1 %v2660_v0  ;;  %v2437_v44 = vld [vmem:[%s2853_s12 + $0x80] ss:$12 sps:$4 sm:$0xff]   ;;  %v2440_v45 = vld [vmem:[%s2853_s12 + $0x78] ss:$12 sps:$4 sm:$0xff]   ;;  %v2444_v48 = vld [vmem:[%s2853_s12 + $0x90] ss:$12 sps:$4 sm:$0xff]   ;;  %p2533_p6 = pneg %p2532_p3 }
  0x5e   : > { %1989 = vmatprep.subr.bf16.mxu0 %v2927_v16  ;;  %v2441_v47 = vld [vmem:[%s2853_s12 + $0x98] ss:$12 sps:$4 sm:$0xff]   ;;  %v2447_v49 = vld [vmem:[%s2859_s14 + $0x4] ss:$12 sps:$4 sm:$0xff]   ;;  %v2445_v50 = vld [vmem:[%s2859_s14] ss:$12 sps:$4 sm:$0xff]  }
  0x5f   : > { %v2448_v51 = vld [vmem:[%s2859_s14 + $0x8] ss:$12 sps:$4 sm:$0xff]   ;;  %v2451_v53 = vld [vmem:[%s2859_s14 + $0x18] ss:$12 sps:$4 sm:$0xff]   ;;  %v2452_v54 = vld [vmem:[%s2859_s14 + $0x20] ss:$12 sps:$4 sm:$0xff]  }
  0x60   : > { %2148 = vmatpush3.bf16.msra.mxu1 %v2933_v17  ;;  %v2449_v52 = vld [vmem:[%s2859_s14 + $0x1c] ss:$12 sps:$4 sm:$0xff]   ;;  %v2453_v55 = vld [vmem:[%s2859_s14 + $0x34] ss:$12 sps:$4 sm:$0xff]   ;;  %v2456_v57 = vld [vmem:[%s2859_s14 + $0x38] ss:$12 sps:$4 sm:$0xff]  }
  0x61   : > { %1990 = vmatpush3.bf16.msra.mxu0 %v2940_v18  ;;  %2149 = vmatprep.subr.bf16.mxu1 %v2660_v0  ;;  %v2455_v56 = vld [vmem:[%s2859_s14 + $0x30] ss:$12 sps:$4 sm:$0xff]   ;;  %v2457_v58 = vld [vmem:[%s2859_s14 + $0x4c] ss:$12 sps:$4 sm:$0xff]   ;;  %v2459_v59 = vld [vmem:[%s2859_s14 + $0x48] ss:$12 sps:$4 sm:$0xff]  }
  0x62   : > { %1991 = vmatprep.subr.bf16.mxu0 %v2946_v19  ;;  %v2460_v60 = vld [vmem:[%s2859_s14 + $0x50] ss:$12 sps:$4 sm:$0xff]   ;;  %v2463_v62 = vld [vmem:[%s2859_s14 + $0x60] ss:$12 sps:$4 sm:$0xff]   ;;  %v2464_v63 = vld [vmem:[%s2859_s14 + $0x68] ss:$12 sps:$4 sm:$0xff]  }
  0x63   : > { %v2461_v61 = vld [vmem:[%s2859_s14 + $0x64] ss:$12 sps:$4 sm:$0xff]   ;;  %v2465_v1 = vld [vmem:[%s2859_s14 + $0x7c] ss:$12 sps:$4 sm:$0xff]   ;;  %s2663_s23 = smov [#allocation7]  }
  0x64   : > { %2150 = vmatpush3.bf16.msra.mxu1 %v2952_v20  ;;  %v2467_v2 = vld [vmem:[%s2859_s14 + $0x78] ss:$12 sps:$4 sm:$0xff]   ;;  %v2471_v5 = vld [vmem:[%s2859_s14 + $0x90] ss:$12 sps:$4 sm:$0xff]   ;;  %s2534_s27 = sshll.u32 %s2663_s23, 4  ;;  %s2535_s27 = int_to_ptr.vmem [resolvable:$false] %s2534_s27 }
  0x65   : > { %1992 = vmatpush3.bf16.msra.mxu0 %v2959_v21  ;;  %2151 = vmatprep.subr.bf16.mxu1 %v2660_v0  ;;  %v2472_v6 = vld [vmem:[%s2859_s14 + $0x98] ss:$12 sps:$4 sm:$0xff]   ;;  %s2536_s7 = scalar_lea.vmem %s2535_s27, 2048  ;;  %p2537_p2 = scmp.lt.s32.totalorder %s3317_s26, %s2535_s27 }
  0x66   : > { %1993 = vmatprep.subr.bf16.mxu0 %v2965_v22  ;;  %p2538_p5 = scmp.lt.s32.totalorder %s2536_s7, %s2530_s18 }
  0x68   : > { %2152 = vmatpush3.bf16.msra.mxu1 %v2971_v23  ;;  %p2539_p8 = por %p2538_p5, %p2537_p2 }
  0x69   : > { %1994 = vmatpush3.bf16.msra.mxu0 %v2978_v24  ;;  %2153 = vmatprep.subr.bf16.mxu1 %v2660_v0 }
  0x6a   : > { %1995 = vmatprep.subr.bf16.mxu0 %v2984_v25  ;;  %p2540_p9 = pnand %p2539_p8, %p2533_p6 }
  0x6c   : > { %2154 = vmatpush3.bf16.msra.mxu1 %v2991_v27 }
  0x6d   : > { %1996 = vmatpush3.bf16.msra.mxu0 %v2998_v28  ;;  %2053 = vmatprep.subr.bf16.mxu1 %v2394_v3  ;;  %v2468_v3 = vld [vmem:[%s2859_s14 + $0x80] ss:$12 sps:$4 sm:$0xff]  }
  0x6e   : > { %2183 = vmatprep.subr.bf16.mxu0 %v2660_v0 }
  0x6f   : > { %2156 = vmatmul.mubr.msk.bf16.vlgmr.msra.gmra.mxu1 %vm608_vm3, %v2417_v29 }
  0x70   : > { %670 = vmatmul.mubr.bf16.vlgmr.msra.gmra.mxu0 %v2418_v30  ;;  %2159 = vmatprep.mubr.msk.bf16.mxu1 %vm2661_vm1, %v2660_v0 }
  0x71   : > { %677 = vmatprep.mubr.bf16.mxu0 %v2422_v31  ;;  %2054 = vmatpush3.bf16.msra.mxu1 %v2875_v4  ;;  %v2469_v4 = vld [vmem:[%s2859_s14 + $0x94] ss:$12 sps:$4 sm:$0xff]  }
  0x72   : > { %2055 = vmatprep.subr.bf16.mxu1 %v2397_v7  ;;  %2184 = vmatpush3.bf16.msra.mxu0 %v635_v8 }
  0x73   : > { %2185 = vmatprep.subr.bf16.mxu0 %v2660_v0 }
  0x75   : > { %2056 = vmatpush3.bf16.msra.mxu1 %v2888_v9 }
  0x76   : > { %2057 = vmatprep.subr.bf16.mxu1 %v2400_v11  ;;  %2186 = vmatpush3.bf16.msra.mxu0 %v2893_v10 }
  0x77   : > { %2160 = vmatmul.mubr.msk.bf16.gmra.mxu1 %vm608_vm3, %v2421_v32  ;;  %2187 = vmatprep.subr.bf16.mxu0 %v2660_v0 }
  0x78   : > { %678 = vmatmul.mubr.bf16.gmra.mxu0 %v2424_v33  ;;  %2163 = vmatprep.mubr.msk.bf16.mxu1 %vm2661_vm1, %v2660_v0 }
  0x79   : > { %685 = vmatprep.mubr.bf16.mxu0 %v2426_v34  ;;  %2058 = vmatpush3.bf16.msra.mxu1 %v2903_v12 }
  0x7a   : > { %2059 = vmatprep.subr.bf16.mxu1 %v2908_v13  ;;  %2188 = vmatpush3.bf16.msra.mxu0 %v2914_v14 }
  0x7b   : > { %2189 = vmatprep.subr.bf16.mxu0 %v2660_v0 }
  0x7d   : > { %2060 = vmatpush3.bf16.msra.mxu1 %v2921_v15 }
  0x7e   : > { %2061 = vmatprep.subr.bf16.mxu1 %v2927_v16  ;;  %2190 = vmatpush3.bf16.msra.mxu0 %v2933_v17 }
  0x7f   : > { %2164 = vmatmul.mubr.msk.bf16.gmra.mxu1 %vm608_vm3, %v2425_v35  ;;  %2191 = vmatprep.subr.bf16.mxu0 %v2660_v0 }
  0x80   : > { %686 = vmatmul.mubr.bf16.gmra.mxu0 %v2428_v36  ;;  %2167 = vmatprep.mubr.msk.bf16.mxu1 %vm2661_vm1, %v2660_v0 }
  0x81   : > { %693 = vmatprep.mubr.bf16.mxu0 %v2430_v37  ;;  %2062 = vmatpush3.bf16.msra.mxu1 %v2940_v18 }
  0x82   : > { %2063 = vmatprep.subr.bf16.mxu1 %v2946_v19  ;;  %2192 = vmatpush3.bf16.msra.mxu0 %v2952_v20 }
  0x83   : > { %2193 = vmatprep.subr.bf16.mxu0 %v2660_v0 }
  0x85   : > { %2064 = vmatpush3.bf16.msra.mxu1 %v2959_v21 }
  0x86   : > { %2065 = vmatprep.subr.bf16.mxu1 %v2965_v22  ;;  %2194 = vmatpush3.bf16.msra.mxu0 %v2971_v23 }
  0x87   : > { %2168 = vmatmul.mubr.msk.bf16.gmra.mxu1 %vm608_vm3, %v2429_v38  ;;  %2195 = vmatprep.subr.bf16.mxu0 %v2660_v0 }
  0x88   : > { %694 = vmatmul.mubr.bf16.gmra.mxu0 %v2432_v39  ;;  %2171 = vmatprep.mubr.msk.bf16.mxu1 %vm2661_vm1, %v2660_v0 }
  0x89   : > { %701 = vmatprep.mubr.bf16.mxu0 %v2434_v40  ;;  %2066 = vmatpush3.bf16.msra.mxu1 %v2978_v24 }
  0x8a   : > { %2067 = vmatprep.subr.bf16.mxu1 %v2984_v25  ;;  %2196 = vmatpush3.bf16.msra.mxu0 %v2991_v27 }
  0x8b   : > { %2231 = vmatprep.subr.bf16.mxu0 %v2660_v0 }
  0x8d   : > { %2068 = vmatpush3.bf16.msra.mxu1 %v2998_v28 }
  0x8e   : > { %2225 = vmatprep.subr.bf16.mxu1 %v2660_v0 }
  0x8f   : > { %2172 = vmatmul.mubr.msk.bf16.gmra.mxu1 %vm608_vm3, %v2433_v41 }
  0x90   : > { %702 = vmatmul.mubr.bf16.gmra.mxu0 %v2436_v42  ;;  %2175 = vmatprep.mubr.msk.bf16.mxu1 %vm2661_vm1, %v2660_v0 }
  0x91   : > { %709 = vmatprep.mubr.bf16.mxu0 %v2438_v43 }
  0x97   : > { %2176 = vmatmul.mubr.msk.bf16.gmra.mxu1 %vm608_vm3, %v2437_v44 }
  0x98   : > { %710 = vmatmul.mubr.bf16.gmra.mxu0 %v2440_v45  ;;  %2179 = vmatprep.mubr.msk.bf16.mxu1 %vm2661_vm1, %v2660_v0 }
  0x99   : > { %717 = vmatprep.mubr.bf16.mxu0 %v2442_v46 }
  0x9f   : > { %2180 = vmatmul.mubr.msk.bf16.gmra.mxu1 %vm608_vm3, %v2441_v47 }
  0xa0   : > { %718 = vmatmul.mubr.bf16.gmra.mxu0 %v2444_v48  ;;  %1001 = vmatprep.mubr.bf16.mxu1 %v2447_v49 }
  0xa1   : > { %2197 = vmatprep.mubr.msk.bf16.mxu0 %vm2661_vm1, %v2660_v0 }
  0xa7   : > { %1002 = vmatmul.mubr.bf16.vlgmr.msra.gmra.mxu1 %v2445_v50 }
  0xa8   : > { %2198 = vmatmul.mubr.msk.bf16.vlgmr.msra.gmra.mxu0 %vm608_vm3, %v2448_v51  ;;  %1009 = vmatprep.mubr.bf16.mxu1 %v2449_v52 }
  0xa9   : > { %2201 = vmatprep.mubr.msk.bf16.mxu0 %vm2661_vm1, %v2660_v0 }
  0xaf   : > { %1010 = vmatmul.mubr.bf16.gmra.mxu1 %v2451_v53 }
  0xb0   : > { %2202 = vmatmul.mubr.msk.bf16.gmra.mxu0 %vm608_vm3, %v2452_v54  ;;  %1017 = vmatprep.mubr.bf16.mxu1 %v2453_v55 }
  0xb1   : > { %2205 = vmatprep.mubr.msk.bf16.mxu0 %vm2661_vm1, %v2660_v0 }
  0xb7   : > { %1018 = vmatmul.mubr.bf16.gmra.mxu1 %v2455_v56 }
  0xb8   : > { %2206 = vmatmul.mubr.msk.bf16.gmra.mxu0 %vm608_vm3, %v2456_v57  ;;  %1025 = vmatprep.mubr.bf16.mxu1 %v2457_v58 }
  0xb9   : > { %2209 = vmatprep.mubr.msk.bf16.mxu0 %vm2661_vm1, %v2660_v0 }
  0xbf   : > { %1026 = vmatmul.mubr.bf16.gmra.mxu1 %v2459_v59 }
  0xc0   : > { %2210 = vmatmul.mubr.msk.bf16.gmra.mxu0 %vm608_vm3, %v2460_v60  ;;  %1033 = vmatprep.mubr.bf16.mxu1 %v2461_v61 }
  0xc1   : > { %2213 = vmatprep.mubr.msk.bf16.mxu0 %vm2661_vm1, %v2660_v0 }
  0xc7   : > { %1034 = vmatmul.mubr.bf16.gmra.mxu1 %v2463_v62 }
  0xc8   : > { %2214 = vmatmul.mubr.msk.bf16.gmra.mxu0 %vm608_vm3, %v2464_v63  ;;  %1041 = vmatprep.mubr.bf16.mxu1 %v2465_v1 }
  0xc9   : > { %2217 = vmatprep.mubr.msk.bf16.mxu0 %vm2661_vm1, %v2660_v0 }
  0xcf   : > { %1042 = vmatmul.mubr.bf16.gmra.mxu1 %v2467_v2 }
  0xd0   : > { %2218 = vmatmul.mubr.msk.bf16.gmra.mxu0 %vm608_vm3, %v2468_v3  ;;  %1049 = vmatprep.mubr.bf16.mxu1 %v2469_v4 }
  0xd1   : > { %2221 = vmatprep.mubr.msk.bf16.mxu0 %vm2661_vm1, %v2660_v0 }
  0xd7   : > { %1050 = vmatmul.mubr.bf16.gmra.mxu1 %v2471_v5 }
  0xd8   : > { %2222 = vmatmul.mubr.msk.bf16.gmra.mxu0 %vm608_vm3, %v2472_v6  ;;  %2227 = vmatprep.mubr.msk.bf16.mxu1 %vm2661_vm1, %v2660_v0 }
  0xd9   : > { %2233 = vmatprep.mubr.msk.bf16.mxu0 %vm2661_vm1, %v2660_v0 }
 0x12f   : > { %v3116_v7 = vpop.f32.mrf.mxu1 }
 0x130   : > { %v1997_v8 = vpop.f32.mrf.mxu0 }
 0x131   : > { %v2157_v9 = vpop.f32.mrf.mxu1 }
 0x132   : > { %v1998_v10 = vpop.f32.mrf.mxu0 }
 0x133   : > { %v3118_v11 = vpop.f32.mrf.mxu1  ;;  %v1999_v1 = vadd.f32 %v1998_v10, %v1997_v8 }
 0x134   : > { %v2000_v12 = vpop.f32.mrf.mxu0 }
 0x135   : > { %v2158_v13 = vpop.f32.mrf.mxu1 }
 0x136   : > { %v2001_v14 = vpop.f32.mrf.mxu0  ;;  %v761_v13 = vadd.f32 %v1999_v1, %v3116_v7 }
 0x137   : > { %v3120_v15 = vpop.f32.mrf.mxu1  ;;  %v2002_v4 = vadd.f32 %v2001_v14, %v2000_v12 }
 0x138   : > { %v3122_v16 = vpop.f32.mrf.mxu0 }
 0x139   : > { %v2161_v17 = vpop.f32.mrf.mxu1 }
 0x13a   : > { %v3124_v18 = vpop.f32.mrf.mxu0 }
 0x13b   : > { %v3126_v19 = vpop.f32.mrf.mxu1  ;;  %v2005_v8 = vadd.f32 %v3124_v18, %v3122_v16 }
 0x13c   : > { %v3128_v20 = vpop.f32.mrf.mxu0 }
 0x13d   : > { %v2162_v21 = vpop.f32.mrf.mxu1 }
 0x13e   : > { %v2007_v22 = vpop.f32.mrf.mxu0 }
 0x13f   : > { %v3130_v23 = vpop.f32.mrf.mxu1  ;;  %v2008_v14 = vadd.f32 %v2007_v22, %v3128_v20 }
 0x140   : > { %v3132_v24 = vpop.f32.mrf.mxu0 }
 0x141   : > { %v2165_v25 = vpop.f32.mrf.mxu1 }
 0x142   : > { %v3134_v26 = vpop.f32.mrf.mxu0 }
 0x143   : > { %v3136_v27 = vpop.f32.mrf.mxu1 }
 0x144   : > { %v3138_v28 = vpop.f32.mrf.mxu0 }
 0x145   : > { %v2166_v29 = vpop.f32.mrf.mxu1 }
 0x146   : > { %v3140_v30 = vpop.f32.mrf.mxu0  ;;  %v764_v29 = vadd.f32 %v2002_v4, %v3118_v11  ;;  %v769_v11 = vadd.f32 %v2005_v8, %v3120_v15 }
 0x147   : > { %v3142_v31 = vpop.f32.mrf.mxu1 }
 0x148   : > { %v3144_v32 = vpop.f32.mrf.mxu0 }
 0x149   : > { %v2169_v33 = vpop.f32.mrf.mxu1 }
 0x14a   : > { %v3146_v34 = vpop.f32.mrf.mxu0 }
 0x14b   : > { %v3148_v35 = vpop.f32.mrf.mxu1 }
 0x14c   : > { %v3150_v36 = vpop.f32.mrf.mxu0 }
 0x14d   : > { %v2170_v37 = vpop.f32.mrf.mxu1 }
 0x14e   : > { %v3152_v38 = vpop.f32.mrf.mxu0 }
 0x14f   : > { %v3154_v39 = vpop.f32.mrf.mxu1 }
 0x150   : > { %v3156_v40 = vpop.f32.mrf.mxu0 }
 0x151   : > { %v2173_v41 = vpop.f32.mrf.mxu1 }
 0x152   : > { %v3158_v42 = vpop.f32.mrf.mxu0 }
 0x153   : > { %v3160_v43 = vpop.f32.mrf.mxu1 }
 0x154   : > { %v3162_v44 = vpop.f32.mrf.mxu0 }
 0x155   : > { %v2174_v45 = vpop.f32.mrf.mxu1 }
 0x156   : > { %v3164_v46 = vpop.f32.mrf.mxu0 }
 0x157   : > { %v3166_v47 = vpop.f32.mrf.mxu1 }
 0x158   : > { %v3168_v48 = vpop.f32.mrf.mxu0 }
 0x159   : > { %v2177_v49 = vpop.f32.mrf.mxu1 }
 0x15a   : > { %v3170_v50 = vpop.f32.mrf.mxu0  ;;  %v1147_v49 = vmax.f32 %v761_v13, 0.0 }
 0x15b   : > { %v3172_v51 = vpop.f32.mrf.mxu1 }
 0x15c   : > { %v3174_v52 = vpop.f32.mrf.mxu0 }
 0x15d   : > { %v2178_v53 = vpop.f32.mrf.mxu1 }
 0x15e   : > { %v3176_v54 = vpop.f32.mrf.mxu0 }
 0x15f   : > { %v3178_v55 = vpop.f32.mrf.mxu1 }
 0x160   : > { %v3180_v56 = vpop.f32.mrf.mxu0 }
 0x161   : > { %v2181_v57 = vpop.f32.mrf.mxu1 }
 0x162   : > { %v3182_v58 = vpop.f32.mrf.mxu0  ;;  %v1148_v57 = vmax.f32 %v764_v29, 0.0 }
 0x163   : > { %v3184_v59 = vpop.f32.mrf.mxu1 }
 0x164   : > { %v3186_v60 = vpop.f32.mrf.mxu0 }
 0x165   : > { %v2182_v61 = vpop.f32.mrf.mxu1 }
 0x166   : > { %v3188_v62 = vpop.f32.mrf.mxu0 }
 0x167   : > { %v2069_v63 = vpop.f32.mrf.mxu1 }
 0x168   : > { %v1092_v2 = vpop.f32.mrf.mxu0 }
 0x169   : > { %v2070_v3 = vpop.f32.mrf.mxu1 }
 0x16a   : > { %v2071_v5 = vadd.f32 %v2070_v3, %v2069_v63  ;;  %v2199_v6 = vpop.f32.mrf.mxu0 }
 0x16b   : > { %v2072_v9 = vpop.f32.mrf.mxu1  ;;  %v772_v6 = vadd.f32 %v2008_v14, %v3126_v19  ;;  %v3205_v14 = vld [vmem:[%s3388_s3] sm:$0xff]  }
 0x16c   : > { %v1093_v17 = vadd.f32 %v2071_v5, %v1092_v2  ;;  %v1095_v21 = vpop.f32.mrf.mxu0 }
 0x16d   : > { %v2073_v25 = vpop.f32.mrf.mxu1 }
 0x16e   : > { %v1161_v33 = vmax.f32 %v1093_v17, 0.0  ;;  %v2074_v37 = vadd.f32 %v2073_v25, %v2072_v9  ;;  %v2200_v41 = vpop.f32.mrf.mxu0  ;;  %v2011_v25 = vadd.f32 %v3134_v26, %v3132_v24 }
 0x16f   : > { %v2075_v45 = vpop.f32.mrf.mxu1  ;;  %v2014_v41 = vadd.f32 %v3140_v30, %v3138_v28 }
 0x170   : > { %v1096_v10 = vadd.f32 %v2074_v37, %v1095_v21  ;;  %v1100_v12 = vpop.f32.mrf.mxu0  ;;  %v1175_v7 = vsub.f32 %v1147_v49, %v1161_v33  ;;  %v1149_v21 = vmax.f32 %v769_v11, 0.0  ;;  %v1150_v37 = vmax.f32 %v772_v6, 0.0 }
 0x171   : > { %v2076_v53 = vpop.f32.mrf.mxu1  ;;  %v777_v26 = vadd.f32 %v2011_v25, %v3130_v23  ;;  %v780_v30 = vadd.f32 %v2014_v41, %v3136_v27 }
 0x172   : > { %v1162_v61 = vmax.f32 %v1096_v10, 0.0  ;;  %v2077_v63 = vadd.f32 %v2076_v53, %v2075_v45  ;;  %v2203_v1 = vpop.f32.mrf.mxu0  ;;  %v1189_v16 = vmul.f32 0.25, %v1175_v7 }
 0x173   : > { %v2078_v2 = vpop.f32.mrf.mxu1  ;;  %v1151_v23 = vmax.f32 %v777_v26, 0.0 }
 0x174   : > { %v1176_v3 = vsub.f32 %v1148_v57, %v1162_v61  ;;  %v1101_v4 = vadd.f32 %v2077_v63, %v1100_v12  ;;  %v1103_v5 = vpop.f32.mrf.mxu0 }
 0x175   : > { %v2079_v9 = vpop.f32.mrf.mxu1 }
 0x176   : > { %v1190_v18 = vmul.f32 0.25, %v1176_v3  ;;  %v1163_v13 = vmax.f32 %v1101_v4, 0.0  ;;  %v2080_v17 = vadd.f32 %v2079_v9, %v2078_v2  ;;  %v2204_v20 = vpop.f32.mrf.mxu0  ;;  %v2017_v4 = vadd.f32 %v3146_v34, %v3144_v32 }
 0x177   : > { %v2081_v22 = vpop.f32.mrf.mxu1  ;;  %v1152_v9 = vmax.f32 %v780_v30, 0.0 }
 0x178   : > { %v1104_v29 = vadd.f32 %v2080_v17, %v1103_v5  ;;  %v1108_v33 = vpop.f32.mrf.mxu0  ;;  %v1203_v15 = vpack.c.bf16 %v1190_v18, %v1189_v16  ;;  %v1177_v45 = vsub.f32 %v1149_v21, %v1163_v13  ;;  %v2020_v16 = vadd.f32 %v3152_v38, %v3150_v36 }
 0x179   : > { %v2082_v19 = vpop.f32.mrf.mxu1 }
 0x17a   : > { %v1164_v49 = vmax.f32 %v1104_v29, 0.0  ;;  %v2083_v8 = vadd.f32 %v2082_v19, %v2081_v22  ;;  %v1223_v10 = vsel %vm1221_vm4, %v1203_v15, 0  ;;  %v2207_v12 = vpop.f32.mrf.mxu0  ;;  %v1191_v61 = vmul.f32 0.25, %v1177_v45 }
 0x17b   : > { %v2084_v24 = vpop.f32.mrf.mxu1  ;;  %2226 = vmatpush3.bf16.msra.mxu1 %v1223_v10  ;;  %v1280_v20 = vrot.slane %v1203_v15, 7  ;;  %v788_v41 = vadd.f32 %v2020_v16, %v3148_v35 }
 0x17c   : > { %v1178_v53 = vsub.f32 %v1150_v37, %v1164_v49  ;;  %v1109_v57 = vadd.f32 %v2083_v8, %v1108_v33  ;;  %v1111_v28 = vpop.f32.mrf.mxu0  ;;  %2237 = vmatprep.subr.bf16.mxu1 %v2660_v0  ;;  %v785_v33 = vadd.f32 %v2017_v4, %v3142_v31  ;;  %v2023_v31 = vadd.f32 %v3158_v42, %v3156_v40 }
 0x17d   : > { %v2085_v7 = vpop.f32.mrf.mxu1 }
 0x17e   : > { %v1192_v63 = vmul.f32 0.25, %v1178_v53  ;;  %v1165_v1 = vmax.f32 %v1109_v57, 0.0  ;;  %v2086_v2 = vadd.f32 %v2085_v7, %v2084_v24  ;;  %v2208_v11 = vpop.f32.mrf.mxu0  ;;  %2228 = vmatmul.mubr.msk.bf16.vlgmr.msra.gmra.mxu1 %vm1217_vm5, %v3205_v14  ;;  %v1153_v24 = vmax.f32 %v785_v33, 0.0 }
 0x17f   : > { %v2087_v3 = vpop.f32.mrf.mxu1  ;;  %2239 = vmatprep.mubr.msk.bf16.mxu1 %vm2661_vm1, %v2660_v0  ;;  %v1154_v57 = vmax.f32 %v788_v41, 0.0  ;;  %v793_v42 = vadd.f32 %v2023_v31, %v3154_v39  ;;  %v2029_v39 = vadd.f32 %v3170_v50, %v3168_v48 }
 0x180   : > { %v1204_v5 = vpack.c.bf16 %v1192_v63, %v1191_v61  ;;  %v1112_v6 = vadd.f32 %v2086_v2, %v1111_v28  ;;  %v1116_v27 = vpop.f32.mrf.mxu0  ;;  %v1179_v17 = vsub.f32 %v1151_v23, %v1165_v1  ;;  %v2026_v28 = vadd.f32 %v3164_v46, %v3162_v44 }
 0x181   : > { %v2088_v18 = vpop.f32.mrf.mxu1 }
 0x182   : > { %v1281_v13 = vrot.slane %v1204_v5, 7  ;;  %v1166_v22 = vmax.f32 %v1112_v6, 0.0  ;;  %v2211_v21 = vpop.f32.mrf.mxu0  ;;  %v2089_v25 = vadd.f32 %v2088_v18, %v2087_v3  ;;  %v1193_v38 = vmul.f32 0.25, %v1179_v17 }
 0x183   : > { %v2090_v29 = vpop.f32.mrf.mxu1  ;;  %v1340_v30 = vrot.slane %v1204_v5, 6  ;;  %v796_v4 = vadd.f32 %v2026_v28, %v3160_v43 }
 0x184   : > { %v1180_v37 = vsub.f32 %v1152_v9, %v1166_v22  ;;  %v1282_v32 = vsel %vm1279_vm6, %v1280_v20, %v1281_v13  ;;  %v1119_v34 = vpop.f32.mrf.mxu0  ;;  %v1117_v19 = vadd.f32 %v2089_v25, %v1116_v27  ;;  %v1155_v20 = vmax.f32 %v793_v42, 0.0 }
 0x185   : > { %v2091_v45 = vpop.f32.mrf.mxu1  ;;  %v1284_v36 = vsel %vm1221_vm4, %v1282_v32, 0  ;;  %v1156_v43 = vmax.f32 %v796_v4, 0.0 }
 0x186   : > { %v1194_v49 = vmul.f32 0.25, %v1180_v37  ;;  %v2092_v8 = vadd.f32 %v2091_v45, %v2090_v29  ;;  %2232 = vmatpush3.bf16.msra.mxu0 %v1284_v36  ;;  %v2212_v15 = vpop.f32.mrf.mxu0  ;;  %v1167_v10 = vmax.f32 %v1117_v19, 0.0  ;;  %v2032_v29 = vadd.f32 %v3176_v54, %v3174_v52 }
 0x187   : > { %v2093_v12 = vpop.f32.mrf.mxu1  ;;  %2243 = vmatprep.subr.bf16.mxu0 %v2660_v0  ;;  %v801_v45 = vadd.f32 %v2029_v39, %v3166_v47  ;;  %v2035_v47 = vadd.f32 %v3182_v58, %v3180_v56 }
 0x188   : > { %v1205_v26 = vpack.c.bf16 %v1194_v49, %v1193_v38  ;;  %v1120_v53 = vadd.f32 %v2092_v8, %v1119_v34  ;;  %v1124_v35 = vpop.f32.mrf.mxu0  ;;  %v1181_v63 = vsub.f32 %v1153_v24, %v1167_v10  ;;  %v804_v54 = vadd.f32 %v2032_v29, %v3172_v51 }
 0x189   : > { %v2094_v7 = vpop.f32.mrf.mxu1  ;;  %2234 = vmatmul.mubr.msk.bf16.vlgmr.msra.gmra.mxu0 %vm1217_vm5, %v3205_v14  ;;  %v809_v58 = vadd.f32 %v2035_v47, %v3178_v55 }
 0x18a   : > { %v1341_v61 = vrot.slane %v1205_v26, 6  ;;  %v1168_v1 = vmax.f32 %v1120_v53, 0.0  ;;  %v2095_v2 = vadd.f32 %v2094_v7, %v2093_v12  ;;  %v2215_v11 = vpop.f32.mrf.mxu0  ;;  %2245 = vmatprep.mubr.msk.bf16.mxu0 %vm2661_vm1, %v2660_v0  ;;  %v1195_v27 = vmul.f32 0.25, %v1181_v63 }
 0x18b   : > { %v2096_v40 = vpop.f32.mrf.mxu1  ;;  %v1400_v37 = vrot.slane %v1205_v26, 5  ;;  %v2038_v7 = vadd.f32 %v3188_v62, %v3186_v60 }
 0x18c   : > { %v1182_v3 = vsub.f32 %v1154_v57, %v1168_v1  ;;  %v1125_v23 = vadd.f32 %v2095_v2, %v1124_v35  ;;  %v1342_v44 = vsel %vm1339_vm7, %v1340_v30, %v1341_v61  ;;  %v1127_v46 = vpop.f32.mrf.mxu0  ;;  %v1157_v35 = vmax.f32 %v801_v45, 0.0 }
 0x18d   : > { %v2097_v5 = vpop.f32.mrf.mxu1  ;;  %v1344_v6 = vsel %vm1221_vm4, %v1342_v44, 0  ;;  %v1158_v30 = vmax.f32 %v804_v54, 0.0  ;;  %v812_v44 = vadd.f32 %v2038_v7, %v3184_v59 }
 0x18e   : > { %v1196_v9 = vmul.f32 0.25, %v1182_v3  ;;  %v1169_v16 = vmax.f32 %v1125_v23, 0.0  ;;  %v2098_v18 = vadd.f32 %v2097_v5, %v2096_v40  ;;  %2238 = vmatpush3.bf16.msra.mxu1 %v1344_v6  ;;  %v2216_v13 = vpop.f32.mrf.mxu0 }
 0x18f   : > { %v2099_v17 = vpop.f32.mrf.mxu1  ;;  %2249 = vmatprep.subr.bf16.mxu1 %v2660_v0 }
 0x190   : > { %v1206_v22 = vpack.c.bf16 %v1196_v9, %v1195_v27  ;;  %v1128_v21 = vadd.f32 %v2098_v18, %v1127_v46  ;;  %v1132_v25 = vpop.f32.mrf.mxu0  ;;  %v1183_v34 = vsub.f32 %v1155_v20, %v1169_v16  ;;  %v1159_v18 = vmax.f32 %v809_v58, 0.0 }
 0x191   : > { %v2100_v33 = vpop.f32.mrf.mxu1  ;;  %2240 = vmatmul.mubr.msk.bf16.vlgmr.msra.gmra.mxu1 %vm1217_vm5, %v3205_v14 }
 0x192   : > { %v1401_v32 = vrot.slane %v1206_v22, 5  ;;  %v1170_v41 = vmax.f32 %v1128_v21, 0.0  ;;  %v2219_v19 = vpop.f32.mrf.mxu0  ;;  %2251 = vmatprep.mubr.msk.bf16.mxu1 %vm2661_vm1, %v2660_v0  ;;  %v2101_v48 = vadd.f32 %v2100_v33, %v2099_v17  ;;  %v1197_v10 = vmul.f32 0.25, %v1183_v34 }
 0x193   : > { %v2102_v50 = vpop.f32.mrf.mxu1  ;;  %v1460_v61 = vrot.slane %v1206_v22, 4  ;;  %v1160_v17 = vmax.f32 %v812_v44, 0.0 }
 0x194   : > { %v1184_v36 = vsub.f32 %v1156_v43, %v1170_v41  ;;  %v1402_v38 = vsel %vm1399_vm8, %v1400_v37, %v1401_v32  ;;  %v1135_v52 = vpop.f32.mrf.mxu0  ;;  %v1133_v49 = vadd.f32 %v2101_v48, %v1132_v25 }
 0x195   : > { %v2103_v8 = vpop.f32.mrf.mxu1  ;;  %v1404_v15 = vsel %vm1221_vm4, %v1402_v38, 0 }
 0x196   : > { %v1198_v12 = vmul.f32 0.25, %v1184_v36  ;;  %v2104_v24 = vadd.f32 %v2103_v8, %v2102_v50  ;;  %2244 = vmatpush3.bf16.msra.mxu0 %v1404_v15  ;;  %v2220_v31 = vpop.f32.mrf.mxu0  ;;  %v1171_v26 = vmax.f32 %v1133_v49, 0.0 }
 0x197   : > { %v2105_v53 = vpop.f32.mrf.mxu1  ;;  %2255 = vmatprep.subr.bf16.mxu0 %v2660_v0 }
 0x198   : > { %v1207_v57 = vpack.c.bf16 %v1198_v12, %v1197_v10  ;;  %v1136_v28 = vadd.f32 %v2104_v24, %v1135_v52  ;;  %v1140_v51 = vpop.f32.mrf.mxu0  ;;  %v1185_v2 = vsub.f32 %v1157_v35, %v1171_v26 }
 0x199   : > { %v2106_v63 = vpop.f32.mrf.mxu1  ;;  %2246 = vmatmul.mubr.msk.bf16.vlgmr.msra.gmra.mxu0 %vm1217_vm5, %v3205_v14 }
 0x19a   : > { %v1461_v1 = vrot.slane %v1207_v57, 4  ;;  %v1172_v11 = vmax.f32 %v1136_v28, 0.0  ;;  %v2107_v40 = vadd.f32 %v2106_v63, %v2105_v53  ;;  %v2223_v42 = vpop.f32.mrf.mxu0  ;;  %2257 = vmatprep.mubr.msk.bf16.mxu0 %vm2661_vm1, %v2660_v0  ;;  %v1199_v5 = vmul.f32 0.25, %v1185_v2 }
 0x19b   : > { %v2108_v56 = vpop.f32.mrf.mxu1  ;;  %v1520_v20 = vrot.slane %v1207_v57, 3 }
 0x19c   : > { %v1186_v3 = vsub.f32 %v1158_v30, %v1172_v11  ;;  %v1141_v23 = vadd.f32 %v2107_v40, %v1140_v51  ;;  %v1462_v60 = vsel %vm1459_vm9, %v1460_v61, %v1461_v1  ;;  %v1143_v62 = vpop.f32.mrf.mxu0 }
 0x19d   : > { %v2109_v46 = vpop.f32.mrf.mxu1  ;;  %v1464_v4 = vsel %vm1221_vm4, %v1462_v60, 0 }
 0x19e   : > { %v1200_v6 = vmul.f32 0.25, %v1186_v3  ;;  %v1173_v27 = vmax.f32 %v1141_v23, 0.0  ;;  %v2110_v9 = vadd.f32 %v2109_v46, %v2108_v56  ;;  %2250 = vmatpush3.bf16.msra.mxu1 %v1464_v4  ;;  %v2224_v16 = vpop.f32.mrf.mxu0 }
 0x19f   : > { %2261 = vmatprep.subr.bf16.mxu1 %v2660_v0 }
 0x1a0   : > { %v1208_v13 = vpack.c.bf16 %v1200_v6, %v1199_v5  ;;  %v1144_v55 = vadd.f32 %v2110_v9, %v1143_v62  ;;  %v1187_v39 = vsub.f32 %v1159_v18, %v1173_v27 }
 0x1a1   : > { %2252 = vmatmul.mubr.msk.bf16.vlgmr.msra.gmra.mxu1 %vm1217_vm5, %v3205_v14 }
 0x1a2   : > { %v1521_v59 = vrot.slane %v1208_v13, 3  ;;  %v1174_v22 = vmax.f32 %v1144_v55, 0.0  ;;  %2263 = vmatprep.mubr.msk.bf16.mxu1 %vm2661_vm1, %v2660_v0  ;;  %v1201_v29 = vmul.f32 0.25, %v1187_v39  ;;  %v1580_v32 = vrot.slane %v1208_v13, 2 }
 0x1a4   : > { %v1188_v21 = vsub.f32 %v1160_v17, %v1174_v22  ;;  %v1522_v25 = vsel %vm630_vm0, %v1520_v20, %v1521_v59 }
 0x1a5   : > { %v1524_v43 = vsel %vm1221_vm4, %v1522_v25, 0 }
 0x1a6   : > { %v1202_v33 = vmul.f32 0.25, %v1188_v21  ;;  %2256 = vmatpush3.bf16.msra.mxu0 %v1524_v43 }
 0x1a7   : > { %2267 = vmatprep.subr.bf16.mxu0 %v2660_v0 }
 0x1a8   : > { %v1209_v37 = vpack.c.bf16 %v1202_v33, %v1201_v29 }
 0x1a9   : > { %2258 = vmatmul.mubr.msk.bf16.vlgmr.msra.gmra.mxu0 %vm1217_vm5, %v3205_v14 }
 0x1aa   : > { %v1581_v34 = vrot.slane %v1209_v37, 2  ;;  %v1638_v41 = vrot.slane %v1209_v37, 1  ;;  %2269 = vmatprep.mubr.msk.bf16.mxu0 %vm2661_vm1, %v2660_v0 }
 0x1ac   : > { %v1640_v19 = vsel %vm1221_vm4, %v1638_v41, 0  ;;  %v1582_v48 = vsel %vm631_vm2, %v1580_v32, %v1581_v34 }
 0x1ad   : > { %2268 = vmatpush3.bf16.msra.mxu0 %v1640_v19  ;;  %v1584_v50 = vsel %vm1221_vm4, %v1582_v48, 0 }
 0x1ae   : > { %2262 = vmatpush3.bf16.msra.mxu1 %v1584_v50 }
 0x1b1   : > { %2264 = vmatmul.mubr.msk.bf16.vlgmr.msra.gmra.mxu1 %vm1217_vm5, %v3205_v14  ;;  %2270 = vmatmul.mubr.msk.bf16.vlgmr.msra.gmra.mxu0 %vm1217_vm5, %v3205_v14 }
 0x23e   : > { %v1259_v45 = vpop.f32.mrf.mxu1 }
 0x23f   : > { %v1964_v0 = vpack.c.bf16 %v1259_v45, %v1259_v45 }
 0x240   : > { %v2229_v36 = vpop.f32.mrf.mxu1 }
 0x241   : > { %1275 = vst.msk [vmem:[%s3279_s11] sm:$0xf] %vm1274_vm10, %v1964_v0 }
 0x242   : > { %v1262_v38 = vpop.f32.mrf.mxu1 }
 0x243   : > { %v1965_v52 = vpack.c.bf16 %v1262_v38, %v1262_v38 }
 0x244   : > { %v2230_v54 = vpop.f32.mrf.mxu1 }
 0x245   : > { %1276 = vst.msk [vmem:[%s3279_s11 + $0x4] sm:$0xf] %vm1274_vm10, %v1965_v52 }
 0x249   : > { %v1320_v14 = vpop.f32.mrf.mxu0 }
 0x24a   : > { %v1966_v49 = vpack.c.bf16 %v1320_v14, %v1320_v14 }
 0x24b   : > { %v2235_v8 = vpop.f32.mrf.mxu0 }
 0x24c   : > { %1925 = vst.msk [vmem:[%s3279_s11 + $0x8] sm:$0xf] %vm1274_vm10, %v1966_v49 }
 0x24d   : > { %v1323_v15 = vpop.f32.mrf.mxu0 }
 0x24e   : > { %v1967_v10 = vpack.c.bf16 %v1323_v15, %v1323_v15 }
 0x24f   : > { %v2236_v12 = vpop.f32.mrf.mxu0 }
 0x250   : > { %1926 = vst.msk [vmem:[%s3279_s11 + $0xc] sm:$0xf] %vm1274_vm10, %v1967_v10 }
 0x251   : > { %v1380_v24 = vpop.f32.mrf.mxu1 }
 0x252   : > { %v1968_v31 = vpack.c.bf16 %v1380_v24, %v1380_v24 }
 0x253   : > { %v2241_v26 = vpop.f32.mrf.mxu1 }
 0x254   : > { %1930 = vst.msk [vmem:[%s3279_s11 + $0x10] sm:$0xf] %vm1274_vm10, %v1968_v31 }
 0x255   : > { %v1383_v53 = vpop.f32.mrf.mxu1 }
 0x256   : > { %v1969_v35 = vpack.c.bf16 %v1383_v53, %v1383_v53 }
 0x257   : > { %v2242_v47 = vpop.f32.mrf.mxu1 }
 0x258   : > { %1931 = vst.msk [vmem:[%s3279_s11 + $0x14] sm:$0xf] %vm1274_vm10, %v1969_v35 }
 0x259   : > { %v1440_v57 = vpop.f32.mrf.mxu0 }
 0x25a   : > { %v1970_v28 = vpack.c.bf16 %v1440_v57, %v1440_v57 }
 0x25b   : > { %v2247_v51 = vpop.f32.mrf.mxu0 }
 0x25c   : > { %1935 = vst.msk [vmem:[%s3279_s11 + $0x18] sm:$0xf] %vm1274_vm10, %v1970_v28 }
 0x25d   : > { %v1443_v30 = vpop.f32.mrf.mxu0 }
 0x25e   : > { %v1971_v7 = vpack.c.bf16 %v1443_v30, %v1443_v30 }
 0x25f   : > { %v2248_v61 = vpop.f32.mrf.mxu0 }
 0x260   : > { %1936 = vst.msk [vmem:[%s3279_s11 + $0x1c] sm:$0xf] %vm1274_vm10, %v1971_v7 }
 0x261   : > { %v1500_v63 = vpop.f32.mrf.mxu1 }
 0x262   : > { %v1972_v1 = vpack.c.bf16 %v1500_v63, %v1500_v63 }
 0x263   : > { %v2253_v2 = vpop.f32.mrf.mxu1 }
 0x264   : > { %1940 = vst.msk [vmem:[%s3279_s11 + $0x20] sm:$0xf] %vm1274_vm10, %v1972_v1 }
 0x265   : > { %v1503_v11 = vpop.f32.mrf.mxu1 }
 0x266   : > { %v1973_v40 = vpack.c.bf16 %v1503_v11, %v1503_v11 }
 0x267   : > { %v2254_v42 = vpop.f32.mrf.mxu1 }
 0x268   : > { %1941 = vst.msk [vmem:[%s3279_s11 + $0x24] sm:$0xf] %vm1274_vm10, %v1973_v40 }
 0x269   : > { %v1560_v56 = vpop.f32.mrf.mxu0 }
 0x26a   : > { %v1974_v58 = vpack.c.bf16 %v1560_v56, %v1560_v56 }
 0x26b   : > { %v2259_v3 = vpop.f32.mrf.mxu0 }
 0x26c   : > { %1945 = vst.msk [vmem:[%s3279_s11 + $0x28] sm:$0xf] %vm1274_vm10, %v1974_v58 }
 0x26d   : > { %v1563_v23 = vpop.f32.mrf.mxu0 }
 0x26e   : > { %v1975_v60 = vpack.c.bf16 %v1563_v23, %v1563_v23 }
 0x26f   : > { %v2260_v62 = vpop.f32.mrf.mxu0 }
 0x270   : > { %1946 = vst.msk [vmem:[%s3279_s11 + $0x2c] sm:$0xf] %vm1274_vm10, %v1975_v60 }
 0x271   : > { %v1620_v44 = vpop.f32.mrf.mxu1  ;;  %v1676_v46 = vpop.f32.mrf.mxu0 }
 0x272   : > { %v1976_v4 = vpack.c.bf16 %v1620_v44, %v1620_v44  ;;  %v1978_v5 = vpack.c.bf16 %v1676_v46, %v1676_v46 }
 0x273   : > { %v2265_v6 = vpop.f32.mrf.mxu1  ;;  %v2271_v27 = vpop.f32.mrf.mxu0 }
 0x274   : > { %1950 = vst.msk [vmem:[%s3279_s11 + $0x30] sm:$0xf] %vm1274_vm10, %v1976_v4  ;;  %1955 = vst.msk [vmem:[%s3279_s11 + $0x38] sm:$0xf] %vm1274_vm10, %v1978_v5 }
 0x275   : > { %v1623_v9 = vpop.f32.mrf.mxu1  ;;  %v1679_v16 = vpop.f32.mrf.mxu0 }
 0x276   : > { %v1977_v18 = vpack.c.bf16 %v1623_v9, %v1623_v9  ;;  %v1979_v13 = vpack.c.bf16 %v1679_v16, %v1679_v16 }
 0x277   : > { %v2266_v55 = vpop.f32.mrf.mxu1  ;;  %v2272_v17 = vpop.f32.mrf.mxu0 }
 0x278   : > { %1951 = vst.msk [vmem:[%s3279_s11 + $0x34] sm:$0xf] %vm1274_vm10, %v1977_v18  ;;  %1956 = vst.msk [vmem:[%s3279_s11 + $0x3c] sm:$0xf] %vm1274_vm10, %v1979_v13 }
 0x279   : > { %2543 = shalt.err (!%p2540_p9)
}
 0x27a   : > { %s2544_s29 = scalar_lea.hbm %s3315_s13, 1024  ;;  %s2548_s12 = scalar_lea.hbm %s3389_s4, 4096 }
 0x27b   : > { %p2545_p10 = scmp.ne.s32.totalorder %s3315_s13, %s2544_s29  ;;  %p2549_p12 = scmp.lt.s32.totalorder %s3315_s13, %s3389_s4 }
 0x27c   : > { %p2550_p13 = scmp.lt.s32.totalorder %s2548_s12, %s2544_s29 }
 0x27d   : > { %p2546_p11 = pnand %p2545_p10, %p2794_p0 }
 0x27e   : > { %p2551_p7 = por %p2550_p13, %p2549_p12 }
 0x27f   : > { %p2547_p4 = pneg %p2546_p11 }
 0x281   : > { %p2552_p3 = pnand %p2551_p7, %p2547_p4 }
 0x283   : > { %2555 = shalt.err (!%p2552_p3)
}
 0x284   : > { %s2664_s0 = smov 64   ;;  %s2665_s11 = smov 4  }
 0x285   : > { %2282 = dma.vmem_to_hbm [thread:$0]  (%p2794_p0), %s3317_s26, 1024, %s3315_s13, %s3325_s8, %s2664_s0, %s2664_s0, %s2665_s11  }
 0x286 PF: > { %p2298_p6 = scmp.ge.s32.totalorder %s2654_s25, 2  ;;  %s1726_s6 = sand.u32 1, %s2614_s15  }
 0x287   : > { %s1727_s17 = scalar_lea.sflag [#allocation4], %s1726_s6 }
 0x288   : > { %p2292_p2 = pnand %p2298_p6, %p2798_p1 }
 0x28a   : > { %p2293_p5 = pneg %p2292_p2 }
 0x28c   : > { %2609 = dma.done.wait (%p2293_p5), %s1727_s17, 1024  }
 0x28d   : > { %2611 = vsyncadd (%p2293_p5), %s1727_s17, 4294966272  ;;  %s23_s25 = sadd.s32 1, %s2654_s25   ;;  %s3415_s20 = sld [smem:[#allocation11_spill]] }
 0x28e   : > { %p20_p8 = scmp.ge.s32.totalorder %s23_s25, 6   ;;  %s3416_s17 = sld [smem:[#allocation17_spill]] }
 0x28f   : > { %s3417_s9 = sld [smem:[#allocation12_spill]]  ;;  %s3423_s15 = smov %s2618_s16 }
 0x290   : > { %s3418_s30 = sld [smem:[#allocation18_spill]]  ;;  %s3425_s18 = smov %s2630_s19 }
 0x291   : > { %s3419_s21 = sld [smem:[#allocation13_spill]] }
 0x292   : > { %s3420_s22 = sld [smem:[#allocation14_spill]]  ;;  %22 = sbr.rel (!%p20_p8) target bundleno = 13 (0xd), region = 101 }
 0x293   : > { %s3421_s23 = sld [smem:[#allocation15_spill]]  ;;  %s3424_s16 = smov %s3415_s20 }
 0x294   : > { %s3422_s24 = sld [smem:[#allocation16_spill]] }
 0x295   : > { %s3426_s19 = smov %s3417_s9 }
 0x296   : > { %s3427_s20 = smov %s3418_s30 }
 0x297   :  { %1732 = vsyncpa [#allocation3], 1 }
 0x298   :  { %1734 = vsyncpa [#allocation3 + $0x1], 1 }
 0x299   :  { %1735 = vsyncpa [#allocation6], 1 }
 0x29a   :  { %1737 = vsyncpa [#allocation6 + $0x1], 1 }
 0x29b   :  { %1738 = vsyncpa [#allocation4], 1 }
 0x29c   :  { %1740 = vsyncpa [#allocation4 + $0x1], 1 }

</bundles_post_ra>
